<compile_context>
chip_gen: v7x
topology: tpu7x:2x2x1
jax: 0.10.0
libtpu: 0.0.40
codegen_flags: <defaults>
</compile_context>

<pallas_src>
import functools

import jax
import jax.numpy as jnp
from jax import lax
from jax.experimental import pallas as pl
from jax.experimental.pallas import tpu as pltpu


# ---------------------------------------------------------------------------
# helpers
# ---------------------------------------------------------------------------
def _round_up(x, m):
    return ((x + m - 1) // m) * m


def _pick_tile(size, target, align):
    """Return (padded_size, tile).  If size <= target the dim becomes a single
    full-extent block padded up to `align`; otherwise tile = target (a multiple
    of `align`) and the dim is padded up to a multiple of it."""
    if size <= target:
        p = _round_up(size, align)
        return p, p
    return _round_up(size, target), target


# ---------------------------------------------------------------------------
# Pallas matmul kernel:  (Cout, K) @ (K, M) -> (Cout, M), K-reduction grid axis
# ---------------------------------------------------------------------------
def _mm_epilogue(acc, bias, act, o_ref):
    if bias is not None:
        acc = acc + bias            # (tn, 1) broadcast along lanes
    if act == "tanh":
        acc = jnp.tanh(acc)
    o_ref[...] = acc.astype(o_ref.dtype)


def _mm_kernel(w_ref, a_ref, o_ref, acc_ref, *, act):
    @pl.when(pl.program_id(2) == 0)
    def _():
        acc_ref[...] = jnp.zeros_like(acc_ref)

    acc_ref[...] += jnp.dot(w_ref[...], a_ref[...],
                            preferred_element_type=jnp.float32)

    @pl.when(pl.program_id(2) == pl.num_programs(2) - 1)
    def _():
        _mm_epilogue(acc_ref[...], None, act, o_ref)


def _mm_bias_kernel(w_ref, a_ref, b_ref, o_ref, acc_ref, *, act):
    @pl.when(pl.program_id(2) == 0)
    def _():
        acc_ref[...] = jnp.zeros_like(acc_ref)

    acc_ref[...] += jnp.dot(w_ref[...], a_ref[...],
                            preferred_element_type=jnp.float32)

    @pl.when(pl.program_id(2) == pl.num_programs(2) - 1)
    def _():
        _mm_epilogue(acc_ref[...], b_ref[...], act, o_ref)


def matmul_cm(wm, a2, bias=None, act="none",
              tn_target=256, tm_target=512, tk_target=1024):
    """wm: (Cout, K), a2: (K, M), bias: (Cout,)|None -> (Cout, M) f32.

    M (= N*Ho*Wo) sits on the lane axis of the output (lane-dense stores);
    inputs are cast to bf16 for the MXU, accumulation stays f32 in scratch."""
    cout, k = wm.shape
    _, m = a2.shape
    np_, tn = _pick_tile(cout, tn_target, 8)
    mp_, tm = _pick_tile(m, tm_target, 128)     # lane-dense output tiles
    kp_, tk = _pick_tile(k, tk_target, 8)

    wm_p = wm if (np_, kp_) == (cout, k) else jnp.pad(
        wm, ((0, np_ - cout), (0, kp_ - k)))
    a2_p = a2 if (kp_, mp_) == (k, m) else jnp.pad(
        a2, ((0, kp_ - k), (0, mp_ - m)))
    wm_p = wm_p.astype(jnp.bfloat16)
    a2_p = a2_p.astype(jnp.bfloat16)

    grid = (np_ // tn, mp_ // tm, kp_ // tk)
    in_specs = [
        pl.BlockSpec((tn, tk), lambda i, j, kk: (i, kk)),
        pl.BlockSpec((tk, tm), lambda i, j, kk: (kk, j)),
    ]
    operands = [wm_p, a2_p]
    if bias is not None:
        b_p = bias.reshape(cout, 1).astype(jnp.float32)
        if np_ != cout:
            b_p = jnp.pad(b_p, ((0, np_ - cout), (0, 0)))
        in_specs.append(pl.BlockSpec((tn, 1), lambda i, j, kk: (i, 0)))
        operands.append(b_p)
        kernel = functools.partial(_mm_bias_kernel, act=act)
    else:
        kernel = functools.partial(_mm_kernel, act=act)

    out = pl.pallas_call(
        kernel,
        out_shape=jax.ShapeDtypeStruct((np_, mp_), jnp.float32),
        grid=grid,
        in_specs=in_specs,
        out_specs=pl.BlockSpec((tn, tm), lambda i, j, kk: (i, j)),
        scratch_shapes=[pltpu.VMEM((tn, tm), jnp.float32)],
        compiler_params=pltpu.CompilerParams(
            dimension_semantics=("parallel", "parallel", "arbitrary")),
    )(*operands)
    if (np_, mp_) != (cout, m):
        out = out[:cout, :m]
    return out


# ---------------------------------------------------------------------------
# InstanceNorm (+ ReLU / + residual add) — single pass, H*W on lanes
# ---------------------------------------------------------------------------
def _in_kernel(x_ref, o_ref, *, eps, act, inv_hw):
    x = x_ref[...]                                    # (t_r, HW) f32
    s1 = jnp.sum(x, axis=1, keepdims=True)            # one pass: sum, sum(x^2)
    s2 = jnp.sum(x * x, axis=1, keepdims=True)
    mean = s1 * inv_hw
    var = jnp.maximum(s2 * inv_hw - mean * mean, 0.0)  # biased var (PyTorch IN)
    y = (x - mean) * lax.rsqrt(var + eps)
    if act == "relu":
        y = jnp.maximum(y, 0.0)
    o_ref[...] = y.astype(o_ref.dtype)


def _in_res_kernel(x_ref, r_ref, o_ref, *, eps, inv_hw):
    x = x_ref[...]
    s1 = jnp.sum(x, axis=1, keepdims=True)
    s2 = jnp.sum(x * x, axis=1, keepdims=True)
    mean = s1 * inv_hw
    var = jnp.maximum(s2 * inv_hw - mean * mean, 0.0)
    y = (x - mean) * lax.rsqrt(var + eps)
    o_ref[...] = (r_ref[...] + y).astype(o_ref.dtype)  # fused residual add


def instance_norm(x, act="relu", residual=None, eps=1e-5):
    """x, residual: (C, N, H, W).  Per-(c, n) normalization over H*W."""
    c, n, h, w = x.shape
    rows, hw = c * n, h * w
    xr = x.reshape(rows, hw)
    t_r = 8 if rows % 8 == 0 else rows
    spec = pl.BlockSpec((t_r, hw), lambda i: (i, 0))
    cparams = pltpu.CompilerParams(dimension_semantics=("parallel",))
    inv_hw = 1.0 / float(hw)
    if residual is None:
        out = pl.pallas_call(
            functools.partial(_in_kernel, eps=eps, act=act, inv_hw=inv_hw),
            out_shape=jax.ShapeDtypeStruct((rows, hw), jnp.float32),
            grid=(rows // t_r,),
            in_specs=[spec],
            out_specs=spec,
            compiler_params=cparams,
        )(xr)
    else:
        out = pl.pallas_call(
            functools.partial(_in_res_kernel, eps=eps, inv_hw=inv_hw),
            out_shape=jax.ShapeDtypeStruct((rows, hw), jnp.float32),
            grid=(rows // t_r,),
            in_specs=[spec, spec],
            out_specs=spec,
            compiler_params=cparams,
        )(xr, residual.reshape(rows, hw))
    return out.reshape(c, n, h, w)


# ---------------------------------------------------------------------------
# Convolutions (im2col glue in JAX, matmul in Pallas) — CNHW layout
# ---------------------------------------------------------------------------
def conv2d(x, w, b=None, *, stride=1, pad=0, pad_mode="zero", act="none"):
    """x: (Cin, N, H, W); w: (Cout, Cin, kh, kw) (PyTorch layout); b: (Cout,)|None."""
    cout, cin, kh, kw = w.shape
    if pad > 0:
        mode = "reflect" if pad_mode == "reflect" else "constant"
        x = jnp.pad(x, ((0, 0), (0, 0), (pad, pad), (pad, pad)), mode=mode)
    _, n, hp, wp = x.shape
    ho = (hp - kh) // stride + 1
    wo = (wp - kw) // stride + 1
    # im2col: K ordered (cin, kh, kw) to match w.reshape(cout, -1); no transposes.
    # For large images this materialized patch tensor should become a kh*kw
    # K-grid axis with shifted index_maps instead (kept as JAX glue at this size).
    taps = []
    for i in range(kh):
        for j in range(kw):
            taps.append(x[:, :, i:i + ho * stride:stride, j:j + wo * stride:stride])
    a2 = jnp.stack(taps, axis=1).reshape(cin * kh * kw, n * ho * wo)
    wm = w.reshape(cout, cin * kh * kw)
    out = matmul_cm(wm, a2, bias=b, act=act)          # (Cout, N*Ho*Wo)
    return out.reshape(cout, n, ho, wo)


def conv_transpose2d(x, w_t):
    """PyTorch ConvTranspose2d(k=3, stride=2, padding=1, output_padding=1).
    x: (Cin, N, H, W); w_t: (Cin, Cout, 3, 3).  Implemented as a stride-1 2x2
    conv producing 4*Cout phase channels + pixel-shuffle (no zero-dilation).
    Bias is skipped: always followed by InstanceNorm, which cancels it."""
    cin, n, h, w = x.shape
    cout = w_t.shape[1]
    wt_oc = jnp.transpose(w_t, (1, 0, 2, 3))          # (Cout, Cin, 3, 3)

    def tap_idx(phase, u):
        # kernel row/col index multiplying x[m+u] for this output phase
        if phase == 0:                                 # even output index
            return 1 if u == 0 else None
        return 2 if u == 0 else 0                      # odd output index

    phase_ws = []
    for a in (0, 1):
        for bb in (0, 1):
            g = jnp.zeros((cout, cin, 2, 2), w_t.dtype)
            for u in (0, 1):
                for v in (0, 1):
                    r, c = tap_idx(a, u), tap_idx(bb, v)
                    if r is not None and c is not None:
                        g = g.at[:, :, u, v].set(wt_oc[:, :, r, c])
            phase_ws.append(g)
    w_comb = jnp.concatenate(phase_ws, axis=0)        # (4*Cout, Cin, 2, 2)

    xp = jnp.pad(x, ((0, 0), (0, 0), (0, 1), (0, 1)))  # boundary taps read 0
    y = conv2d(xp, w_comb, None, stride=1, pad=0)     # (4*Cout, N, H, W)
    y = y.reshape(2, 2, cout, n, h, w)                # (a, b, Cout, N, H, W)
    y = jnp.transpose(y, (2, 3, 4, 0, 5, 1))          # (Cout, N, H, a, W, b)
    return y.reshape(cout, n, 2 * h, 2 * w)


# ---------------------------------------------------------------------------
# Generator (c7s1-k, dk, Rk, uk, c7s1-in)
# ---------------------------------------------------------------------------
IN_CH = 1
BASE = 8          # out_channels (small for the synthetic test)
NUM_DOWN = 2
NUM_RES = 3


def init_params(key):
    params = {}
    keys = iter(jax.random.split(key, 128))

    def conv_p(name, cout, cin, k):
        params[name + "_w"] = 0.05 * jax.random.normal(next(keys), (cout, cin, k, k), jnp.float32)
        params[name + "_b"] = 0.05 * jax.random.normal(next(keys), (cout,), jnp.float32)

    def convt_p(name, cin, cout, k):
        params[name + "_w"] = 0.05 * jax.random.normal(next(keys), (cin, cout, k, k), jnp.float32)
        params[name + "_b"] = 0.05 * jax.random.normal(next(keys), (cout,), jnp.float32)

    f = 1
    conv_p("c0", BASE, IN_CH, 7)
    for i in range(NUM_DOWN):
        conv_p(f"d{i}", BASE * 2 * f, BASE * f, 3)
        f *= 2
    for i in range(NUM_RES):
        conv_p(f"r{i}_1", BASE * f, BASE * f, 3)
        conv_p(f"r{i}_2", BASE * f, BASE * f, 3)
    for i in range(NUM_DOWN):
        convt_p(f"u{i}", BASE * f, BASE * (f // 2), 3)
        f //= 2
    conv_p("cf", IN_CH, BASE, 7)
    return params


def generator_forward(x_nchw, p):
    x = jnp.transpose(x_nchw, (1, 0, 2, 3)).astype(jnp.float32)  # NCHW -> CNHW

    # c7s1-k: ReflectionPad(3) -> Conv7x7 -> InstanceNorm -> ReLU
    # (all conv biases that feed InstanceNorm are skipped: the per-(n,c) mean
    #  subtraction cancels them exactly, so they are pure wasted work)
    x = conv2d(x, p["c0_w"], None, stride=1, pad=3, pad_mode="reflect")
    x = instance_norm(x, act="relu")

    # dk: Conv3x3 s2 p1 -> IN -> ReLU
    for i in range(NUM_DOWN):
        x = conv2d(x, p[f"d{i}_w"], None, stride=2, pad=1, pad_mode="zero")
        x = instance_norm(x, act="relu")

    # Rk residual blocks
    for i in range(NUM_RES):
        r = x
        h = conv2d(r, p[f"r{i}_1_w"], None, stride=1, pad=1, pad_mode="reflect")
        h = instance_norm(h, act="relu")
        # TODO(synk): nn.Dropout(0.5) is stochastic in train mode; eval-mode identity used here.
        h = conv2d(h, p[f"r{i}_2_w"], None, stride=1, pad=1, pad_mode="reflect")
        x = instance_norm(h, act="none", residual=r)   # fused IN + residual add

    # uk: ConvTranspose3x3 s2 p1 op1 -> IN -> ReLU
    for i in range(NUM_DOWN):
        x = conv_transpose2d(x, p[f"u{i}_w"])
        x = instance_norm(x, act="relu")

    # c7s1-in: ReflectionPad(3) -> Conv7x7 -> Tanh (bias + tanh fused in matmul epilogue)
    x = conv2d(x, p["cf_w"], p["cf_b"], stride=1, pad=3, pad_mode="reflect", act="tanh")

    return jnp.transpose(x, (1, 0, 2, 3))  # CNHW -> NCHW


if __name__ == "__main__":
    key = jax.random.PRNGKey(0)
    kp, kx = jax.random.split(key)
    params = init_params(kp)
    x = jax.random.normal(kx, (2, IN_CH, 16, 16), jnp.float32)

    fwd = jax.jit(generator_forward)
    out = jax.block_until_ready(fwd(x, params))

    assert out.shape == (2, IN_CH, 16, 16), out.shape
    assert bool(jnp.all(jnp.isfinite(out)))
    assert bool(jnp.all(jnp.abs(out) <= 1.0))  # tanh output range
    print("KERNEL_OK")
</pallas_src>

<mosaic_0001>
module attributes {stable_mosaic.version = 11 : i64} {
  func.func @_in_kernel(%arg0: i32, %arg1: memref<8x256xf32, #tpu.memory_space<vmem>>, %arg2: memref<8x256xf32, #tpu.memory_space<vmem>>) attributes {dimension_semantics = [#tpu.dimension_semantics<parallel>], iteration_bounds = array<i64: 2>, scalar_prefetch = 0 : i64, scratch_operands = 0 : i64, tpu.core_type = #tpu.core_type<tc>, window_params = [{transform_indices = @transform_0, window_bounds = array<i64: 8, 256>}, {transform_indices = @transform_1, window_bounds = array<i64: 8, 256>}]} {
    %c0 = arith.constant 0 : index
    %c0_0 = arith.constant 0 : index
    %0 = vector.load %arg1[%c0, %c0_0] : memref<8x256xf32, #tpu.memory_space<vmem>>, vector<8x256xf32>
    %cst = arith.constant dense<0.000000e+00> : vector<8xf32>
    %1 = vector.multi_reduction <add>, %0, %cst [1] : vector<8x256xf32> to vector<8xf32>
    %2 = vector.shape_cast %1 : vector<8xf32> to vector<8x1xf32>
    %3 = arith.mulf %0, %0 : vector<8x256xf32>
    %cst_1 = arith.constant dense<0.000000e+00> : vector<8xf32>
    %4 = vector.multi_reduction <add>, %3, %cst_1 [1] : vector<8x256xf32> to vector<8xf32>
    %5 = vector.shape_cast %4 : vector<8xf32> to vector<8x1xf32>
    %cst_2 = arith.constant 3.906250e-03 : f32
    %6 = vector.broadcast %cst_2 : f32 to vector<8x1xf32>
    %7 = arith.mulf %2, %6 : vector<8x1xf32>
    %cst_3 = arith.constant 3.906250e-03 : f32
    %8 = vector.broadcast %cst_3 : f32 to vector<8x1xf32>
    %9 = arith.mulf %5, %8 : vector<8x1xf32>
    %10 = arith.mulf %7, %7 : vector<8x1xf32>
    %11 = arith.subf %9, %10 : vector<8x1xf32>
    %cst_4 = arith.constant 0.000000e+00 : f32
    %12 = vector.broadcast %cst_4 : f32 to vector<8x1xf32>
    %13 = arith.maximumf %11, %12 : vector<8x1xf32>
    %14 = vector.broadcast %7 : vector<8x1xf32> to vector<8x256xf32>
    %15 = arith.subf %0, %14 : vector<8x256xf32>
    %cst_5 = arith.constant 9.99999974E-6 : f32
    %16 = vector.broadcast %cst_5 : f32 to vector<8x1xf32>
    %17 = arith.addf %13, %16 : vector<8x1xf32>
    %18 = math.rsqrt %17 : vector<8x1xf32>
    %19 = vector.broadcast %18 : vector<8x1xf32> to vector<8x256xf32>
    %20 = arith.mulf %15, %19 : vector<8x256xf32>
    %cst_6 = arith.constant 0.000000e+00 : f32
    %21 = vector.broadcast %cst_6 : f32 to vector<8x256xf32>
    %22 = arith.maximumf %20, %21 : vector<8x256xf32>
    %c0_7 = arith.constant 0 : index
    %c0_8 = arith.constant 0 : index
    %23 = vector.load %arg2[%c0_7, %c0_8] : memref<8x256xf32, #tpu.memory_space<vmem>>, vector<8x256xf32>
    tpu.vector_store %arg2[%c0_7, %c0_8], %22 {strides = array<i32>} : memref<8x256xf32, #tpu.memory_space<vmem>>, vector<8x256xf32>,
    return
  }
  func.func @transform_0(%arg0: i32) -> (i32, i32) {
    %c0_i32 = arith.constant 0 : i32
    %c0_i32_0 = arith.constant 0 : i32
    return %arg0, %c0_i32 : i32, i32
  }
  func.func @transform_1(%arg0: i32) -> (i32, i32) {
    %c0_i32 = arith.constant 0 : i32
    %c0_i32_0 = arith.constant 0 : i32
    return %arg0, %c0_i32 : i32, i32
  }
}

module attributes {stable_mosaic.version = 11 : i64} {
  func.func @_mm_kernel(%arg0: i32, %arg1: i32, %arg2: i32, %arg3: memref<8x56xbf16, #tpu.memory_space<vmem>>, %arg4: memref<56x512xbf16, #tpu.memory_space<vmem>>, %arg5: memref<8x512xf32, #tpu.memory_space<vmem>>, %arg6: memref<8x512xf32, #tpu.memory_space<vmem>>) attributes {dimension_semantics = [#tpu.dimension_semantics<parallel>, #tpu.dimension_semantics<parallel>, #tpu.dimension_semantics<arbitrary>], iteration_bounds = array<i64: 1, 1, 1>, scalar_prefetch = 0 : i64, scratch_operands = 1 : i64, tpu.core_type = #tpu.core_type<tc>, window_params = [{transform_indices = @transform_0, window_bounds = array<i64: 8, 56>}, {transform_indices = @transform_1, window_bounds = array<i64: 56, 512>}, {transform_indices = @transform_2, window_bounds = array<i64: 8, 512>}]} {
    %c0_i32 = arith.constant 0 : i32
    %0 = arith.cmpi eq, %arg2, %c0_i32 : i32
    %1 = arith.extui %0 : i1 to i32
    %c0_i32_0 = arith.constant 0 : i32
    %2 = arith.cmpi ne, %1, %c0_i32_0 : i32
    scf.if %2 {
      %cst_10 = arith.constant 0.000000e+00 : f32
      %12 = vector.broadcast %cst_10 : f32 to vector<8x512xf32>
      %c0_11 = arith.constant 0 : index
      %c0_12 = arith.constant 0 : index
      %13 = vector.load %arg6[%c0_11, %c0_12] : memref<8x512xf32, #tpu.memory_space<vmem>>, vector<8x512xf32>
      tpu.vector_store %arg6[%c0_11, %c0_12], %12 {strides = array<i32>} : memref<8x512xf32, #tpu.memory_space<vmem>>, vector<8x512xf32>,
    } else {
    }
    %c0 = arith.constant 0 : index
    %c0_1 = arith.constant 0 : index
    %3 = vector.load %arg6[%c0, %c0_1] : memref<8x512xf32, #tpu.memory_space<vmem>>, vector<8x512xf32>
    %c0_2 = arith.constant 0 : index
    %c0_3 = arith.constant 0 : index
    %4 = vector.load %arg3[%c0_2, %c0_3] : memref<8x56xbf16, #tpu.memory_space<vmem>>, vector<8x56xbf16>
    %c0_4 = arith.constant 0 : index
    %c0_5 = arith.constant 0 : index
    %5 = vector.load %arg4[%c0_4, %c0_5] : memref<56x512xbf16, #tpu.memory_space<vmem>>, vector<56x512xbf16>
    %cst = arith.constant dense<0.000000e+00> : vector<8x512xf32>
    %6 = tpu.matmul %4, %5, %cst {dimension_numbers = #tpu.dot_dimension_numbers<[1], [0], [0], [1], [0, 0, 1, 1], [], []>} : vector<8x56xbf16>, vector<56x512xbf16>, vector<8x512xf32> -> vector<8x512xf32>
    %7 = arith.addf %3, %6 : vector<8x512xf32>
    %c0_6 = arith.constant 0 : index
    %c0_7 = arith.constant 0 : index
    %8 = vector.load %arg6[%c0_6, %c0_7] : memref<8x512xf32, #tpu.memory_space<vmem>>, vector<8x512xf32>
    tpu.vector_store %arg6[%c0_6, %c0_7], %7 {strides = array<i32>} : memref<8x512xf32, #tpu.memory_space<vmem>>, vector<8x512xf32>,
    %c0_i32_8 = arith.constant 0 : i32
    %9 = arith.cmpi eq, %arg2, %c0_i32_8 : i32
    %10 = arith.extui %9 : i1 to i32
    %c0_i32_9 = arith.constant 0 : i32
    %11 = arith.cmpi ne, %10, %c0_i32_9 : i32
    scf.if %11 {
      %c0_10 = arith.constant 0 : index
      %c0_11 = arith.constant 0 : index
      %12 = vector.load %arg6[%c0_10, %c0_11] : memref<8x512xf32, #tpu.memory_space<vmem>>, vector<8x512xf32>
      %c0_12 = arith.constant 0 : index
      %c0_13 = arith.constant 0 : index
      %13 = vector.load %arg5[%c0_12, %c0_13] : memref<8x512xf32, #tpu.memory_space<vmem>>, vector<8x512xf32>
      tpu.vector_store %arg5[%c0_12, %c0_13], %12 {strides = array<i32>} : memref<8x512xf32, #tpu.memory_space<vmem>>, vector<8x512xf32>,
    } else {
    }
    return
  }
  func.func @transform_0(%arg0: i32, %arg1: i32, %arg2: i32) -> (i32, i32) {
    %c0_i32 = arith.constant 0 : i32
    return %arg0, %arg2 : i32, i32
  }
  func.func @transform_1(%arg0: i32, %arg1: i32, %arg2: i32) -> (i32, i32) {
    %c0_i32 = arith.constant 0 : i32
    return %arg2, %arg1 : i32, i32
  }
  func.func @transform_2(%arg0: i32, %arg1: i32, %arg2: i32) -> (i32, i32) {
    %c0_i32 = arith.constant 0 : i32
    return %arg0, %arg1 : i32, i32
  }
}

module attributes {stable_mosaic.version = 11 : i64} {
  func.func @_in_kernel(%arg0: i32, %arg1: memref<8x64xf32, #tpu.memory_space<vmem>>, %arg2: memref<8x64xf32, #tpu.memory_space<vmem>>) attributes {dimension_semantics = [#tpu.dimension_semantics<parallel>], iteration_bounds = array<i64: 4>, scalar_prefetch = 0 : i64, scratch_operands = 0 : i64, tpu.core_type = #tpu.core_type<tc>, window_params = [{transform_indices = @transform_0, window_bounds = array<i64: 8, 64>}, {transform_indices = @transform_1, window_bounds = array<i64: 8, 64>}]} {
    %c0 = arith.constant 0 : index
    %c0_0 = arith.constant 0 : index
    %0 = vector.load %arg1[%c0, %c0_0] : memref<8x64xf32, #tpu.memory_space<vmem>>, vector<8x64xf32>
    %cst = arith.constant dense<0.000000e+00> : vector<8xf32>
    %1 = vector.multi_reduction <add>, %0, %cst [1] : vector<8x64xf32> to vector<8xf32>
    %2 = vector.shape_cast %1 : vector<8xf32> to vector<8x1xf32>
    %3 = arith.mulf %0, %0 : vector<8x64xf32>
    %cst_1 = arith.constant dense<0.000000e+00> : vector<8xf32>
    %4 = vector.multi_reduction <add>, %3, %cst_1 [1] : vector<8x64xf32> to vector<8xf32>
    %5 = vector.shape_cast %4 : vector<8xf32> to vector<8x1xf32>
    %cst_2 = arith.constant 1.562500e-02 : f32
    %6 = vector.broadcast %cst_2 : f32 to vector<8x1xf32>
    %7 = arith.mulf %2, %6 : vector<8x1xf32>
    %cst_3 = arith.constant 1.562500e-02 : f32
    %8 = vector.broadcast %cst_3 : f32 to vector<8x1xf32>
    %9 = arith.mulf %5, %8 : vector<8x1xf32>
    %10 = arith.mulf %7, %7 : vector<8x1xf32>
    %11 = arith.subf %9, %10 : vector<8x1xf32>
    %cst_4 = arith.constant 0.000000e+00 : f32
    %12 = vector.broadcast %cst_4 : f32 to vector<8x1xf32>
    %13 = arith.maximumf %11, %12 : vector<8x1xf32>
    %14 = vector.broadcast %7 : vector<8x1xf32> to vector<8x64xf32>
    %15 = arith.subf %0, %14 : vector<8x64xf32>
    %cst_5 = arith.constant 9.99999974E-6 : f32
    %16 = vector.broadcast %cst_5 : f32 to vector<8x1xf32>
    %17 = arith.addf %13, %16 : vector<8x1xf32>
    %18 = math.rsqrt %17 : vector<8x1xf32>
    %19 = vector.broadcast %18 : vector<8x1xf32> to vector<8x64xf32>
    %20 = arith.mulf %15, %19 : vector<8x64xf32>
    %cst_6 = arith.constant 0.000000e+00 : f32
    %21 = vector.broadcast %cst_6 : f32 to vector<8x64xf32>
    %22 = arith.maximumf %20, %21 : vector<8x64xf32>
    %c0_7 = arith.constant 0 : index
    %c0_8 = arith.constant 0 : index
    %23 = vector.load %arg2[%c0_7, %c0_8] : memref<8x64xf32, #tpu.memory_space<vmem>>, vector<8x64xf32>
    tpu.vector_store %arg2[%c0_7, %c0_8], %22 {strides = array<i32>} : memref<8x64xf32, #tpu.memory_space<vmem>>, vector<8x64xf32>,
    return
  }
  func.func @transform_0(%arg0: i32) -> (i32, i32) {
    %c0_i32 = arith.constant 0 : i32
    %c0_i32_0 = arith.constant 0 : i32
    return %arg0, %c0_i32 : i32, i32
  }
  func.func @transform_1(%arg0: i32) -> (i32, i32) {
    %c0_i32 = arith.constant 0 : i32
    %c0_i32_0 = arith.constant 0 : i32
    return %arg0, %c0_i32 : i32, i32
  }
}

module attributes {stable_mosaic.version = 11 : i64} {
  func.func @_mm_kernel(%arg0: i32, %arg1: i32, %arg2: i32, %arg3: memref<16x72xbf16, #tpu.memory_space<vmem>>, %arg4: memref<72x128xbf16, #tpu.memory_space<vmem>>, %arg5: memref<16x128xf32, #tpu.memory_space<vmem>>, %arg6: memref<16x128xf32, #tpu.memory_space<vmem>>) attributes {dimension_semantics = [#tpu.dimension_semantics<parallel>, #tpu.dimension_semantics<parallel>, #tpu.dimension_semantics<arbitrary>], iteration_bounds = array<i64: 1, 1, 1>, scalar_prefetch = 0 : i64, scratch_operands = 1 : i64, tpu.core_type = #tpu.core_type<tc>, window_params = [{transform_indices = @transform_0, window_bounds = array<i64: 16, 72>}, {transform_indices = @transform_1, window_bounds = array<i64: 72, 128>}, {transform_indices = @transform_2, window_bounds = array<i64: 16, 128>}]} {
    %c0_i32 = arith.constant 0 : i32
    %0 = arith.cmpi eq, %arg2, %c0_i32 : i32
    %1 = arith.extui %0 : i1 to i32
    %c0_i32_0 = arith.constant 0 : i32
    %2 = arith.cmpi ne, %1, %c0_i32_0 : i32
    scf.if %2 {
      %cst_10 = arith.constant 0.000000e+00 : f32
      %12 = vector.broadcast %cst_10 : f32 to vector<16x128xf32>
      %c0_11 = arith.constant 0 : index
      %c0_12 = arith.constant 0 : index
      %13 = vector.load %arg6[%c0_11, %c0_12] : memref<16x128xf32, #tpu.memory_space<vmem>>, vector<16x128xf32>
      tpu.vector_store %arg6[%c0_11, %c0_12], %12 {strides = array<i32>} : memref<16x128xf32, #tpu.memory_space<vmem>>, vector<16x128xf32>,
    } else {
    }
    %c0 = arith.constant 0 : index
    %c0_1 = arith.constant 0 : index
    %3 = vector.load %arg6[%c0, %c0_1] : memref<16x128xf32, #tpu.memory_space<vmem>>, vector<16x128xf32>
    %c0_2 = arith.constant 0 : index
    %c0_3 = arith.constant 0 : index
    %4 = vector.load %arg3[%c0_2, %c0_3] : memref<16x72xbf16, #tpu.memory_space<vmem>>, vector<16x72xbf16>
    %c0_4 = arith.constant 0 : index
    %c0_5 = arith.constant 0 : index
    %5 = vector.load %arg4[%c0_4, %c0_5] : memref<72x128xbf16, #tpu.memory_space<vmem>>, vector<72x128xbf16>
    %cst = arith.constant dense<0.000000e+00> : vector<16x128xf32>
    %6 = tpu.matmul %4, %5, %cst {dimension_numbers = #tpu.dot_dimension_numbers<[1], [0], [0], [1], [0, 0, 1, 1], [], []>} : vector<16x72xbf16>, vector<72x128xbf16>, vector<16x128xf32> -> vector<16x128xf32>
    %7 = arith.addf %3, %6 : vector<16x128xf32>
    %c0_6 = arith.constant 0 : index
    %c0_7 = arith.constant 0 : index
    %8 = vector.load %arg6[%c0_6, %c0_7] : memref<16x128xf32, #tpu.memory_space<vmem>>, vector<16x128xf32>
    tpu.vector_store %arg6[%c0_6, %c0_7], %7 {strides = array<i32>} : memref<16x128xf32, #tpu.memory_space<vmem>>, vector<16x128xf32>,
    %c0_i32_8 = arith.constant 0 : i32
    %9 = arith.cmpi eq, %arg2, %c0_i32_8 : i32
    %10 = arith.extui %9 : i1 to i32
    %c0_i32_9 = arith.constant 0 : i32
    %11 = arith.cmpi ne, %10, %c0_i32_9 : i32
    scf.if %11 {
      %c0_10 = arith.constant 0 : index
      %c0_11 = arith.constant 0 : index
      %12 = vector.load %arg6[%c0_10, %c0_11] : memref<16x128xf32, #tpu.memory_space<vmem>>, vector<16x128xf32>
      %c0_12 = arith.constant 0 : index
      %c0_13 = arith.constant 0 : index
      %13 = vector.load %arg5[%c0_12, %c0_13] : memref<16x128xf32, #tpu.memory_space<vmem>>, vector<16x128xf32>
      tpu.vector_store %arg5[%c0_12, %c0_13], %12 {strides = array<i32>} : memref<16x128xf32, #tpu.memory_space<vmem>>, vector<16x128xf32>,
    } else {
    }
    return
  }
  func.func @transform_0(%arg0: i32, %arg1: i32, %arg2: i32) -> (i32, i32) {
    %c0_i32 = arith.constant 0 : i32
    return %arg0, %arg2 : i32, i32
  }
  func.func @transform_1(%arg0: i32, %arg1: i32, %arg2: i32) -> (i32, i32) {
    %c0_i32 = arith.constant 0 : i32
    return %arg2, %arg1 : i32, i32
  }
  func.func @transform_2(%arg0: i32, %arg1: i32, %arg2: i32) -> (i32, i32) {
    %c0_i32 = arith.constant 0 : i32
    return %arg0, %arg1 : i32, i32
  }
}

module attributes {stable_mosaic.version = 11 : i64} {
  func.func @_in_kernel(%arg0: i32, %arg1: memref<8x16xf32, #tpu.memory_space<vmem>>, %arg2: memref<8x16xf32, #tpu.memory_space<vmem>>) attributes {dimension_semantics = [#tpu.dimension_semantics<parallel>], iteration_bounds = array<i64: 8>, scalar_prefetch = 0 : i64, scratch_operands = 0 : i64, tpu.core_type = #tpu.core_type<tc>, window_params = [{transform_indices = @transform_0, window_bounds = array<i64: 8, 16>}, {transform_indices = @transform_1, window_bounds = array<i64: 8, 16>}]} {
    %c0 = arith.constant 0 : index
    %c0_0 = arith.constant 0 : index
    %0 = vector.load %arg1[%c0, %c0_0] : memref<8x16xf32, #tpu.memory_space<vmem>>, vector<8x16xf32>
    %cst = arith.constant dense<0.000000e+00> : vector<8xf32>
    %1 = vector.multi_reduction <add>, %0, %cst [1] : vector<8x16xf32> to vector<8xf32>
    %2 = vector.shape_cast %1 : vector<8xf32> to vector<8x1xf32>
    %3 = arith.mulf %0, %0 : vector<8x16xf32>
    %cst_1 = arith.constant dense<0.000000e+00> : vector<8xf32>
    %4 = vector.multi_reduction <add>, %3, %cst_1 [1] : vector<8x16xf32> to vector<8xf32>
    %5 = vector.shape_cast %4 : vector<8xf32> to vector<8x1xf32>
    %cst_2 = arith.constant 6.250000e-02 : f32
    %6 = vector.broadcast %cst_2 : f32 to vector<8x1xf32>
    %7 = arith.mulf %2, %6 : vector<8x1xf32>
    %cst_3 = arith.constant 6.250000e-02 : f32
    %8 = vector.broadcast %cst_3 : f32 to vector<8x1xf32>
    %9 = arith.mulf %5, %8 : vector<8x1xf32>
    %10 = arith.mulf %7, %7 : vector<8x1xf32>
    %11 = arith.subf %9, %10 : vector<8x1xf32>
    %cst_4 = arith.constant 0.000000e+00 : f32
    %12 = vector.broadcast %cst_4 : f32 to vector<8x1xf32>
    %13 = arith.maximumf %11, %12 : vector<8x1xf32>
    %14 = vector.broadcast %7 : vector<8x1xf32> to vector<8x16xf32>
    %15 = arith.subf %0, %14 : vector<8x16xf32>
    %cst_5 = arith.constant 9.99999974E-6 : f32
    %16 = vector.broadcast %cst_5 : f32 to vector<8x1xf32>
    %17 = arith.addf %13, %16 : vector<8x1xf32>
    %18 = math.rsqrt %17 : vector<8x1xf32>
    %19 = vector.broadcast %18 : vector<8x1xf32> to vector<8x16xf32>
    %20 = arith.mulf %15, %19 : vector<8x16xf32>
    %cst_6 = arith.constant 0.000000e+00 : f32
    %21 = vector.broadcast %cst_6 : f32 to vector<8x16xf32>
    %22 = arith.maximumf %20, %21 : vector<8x16xf32>
    %c0_7 = arith.constant 0 : index
    %c0_8 = arith.constant 0 : index
    %23 = vector.load %arg2[%c0_7, %c0_8] : memref<8x16xf32, #tpu.memory_space<vmem>>, vector<8x16xf32>
    tpu.vector_store %arg2[%c0_7, %c0_8], %22 {strides = array<i32>} : memref<8x16xf32, #tpu.memory_space<vmem>>, vector<8x16xf32>,
    return
  }
  func.func @transform_0(%arg0: i32) -> (i32, i32) {
    %c0_i32 = arith.constant 0 : i32
    %c0_i32_0 = arith.constant 0 : i32
    return %arg0, %c0_i32 : i32, i32
  }
  func.func @transform_1(%arg0: i32) -> (i32, i32) {
    %c0_i32 = arith.constant 0 : i32
    %c0_i32_0 = arith.constant 0 : i32
    return %arg0, %c0_i32 : i32, i32
  }
}

module attributes {stable_mosaic.version = 11 : i64} {
  func.func @_mm_kernel(%arg0: i32, %arg1: i32, %arg2: i32, %arg3: memref<32x144xbf16, #tpu.memory_space<vmem>>, %arg4: memref<144x128xbf16, #tpu.memory_space<vmem>>, %arg5: memref<32x128xf32, #tpu.memory_space<vmem>>, %arg6: memref<32x128xf32, #tpu.memory_space<vmem>>) attributes {dimension_semantics = [#tpu.dimension_semantics<parallel>, #tpu.dimension_semantics<parallel>, #tpu.dimension_semantics<arbitrary>], iteration_bounds = array<i64: 1, 1, 1>, scalar_prefetch = 0 : i64, scratch_operands = 1 : i64, tpu.core_type = #tpu.core_type<tc>, window_params = [{transform_indices = @transform_0, window_bounds = array<i64: 32, 144>}, {transform_indices = @transform_1, window_bounds = array<i64: 144, 128>}, {transform_indices = @transform_2, window_bounds = array<i64: 32, 128>}]} {
    %c0_i32 = arith.constant 0 : i32
    %0 = arith.cmpi eq, %arg2, %c0_i32 : i32
    %1 = arith.extui %0 : i1 to i32
    %c0_i32_0 = arith.constant 0 : i32
    %2 = arith.cmpi ne, %1, %c0_i32_0 : i32
    scf.if %2 {
      %cst_10 = arith.constant 0.000000e+00 : f32
      %12 = vector.broadcast %cst_10 : f32 to vector<32x128xf32>
      %c0_11 = arith.constant 0 : index
      %c0_12 = arith.constant 0 : index
      %13 = vector.load %arg6[%c0_11, %c0_12] : memref<32x128xf32, #tpu.memory_space<vmem>>, vector<32x128xf32>
      tpu.vector_store %arg6[%c0_11, %c0_12], %12 {strides = array<i32>} : memref<32x128xf32, #tpu.memory_space<vmem>>, vector<32x128xf32>,
    } else {
    }
    %c0 = arith.constant 0 : index
    %c0_1 = arith.constant 0 : index
    %3 = vector.load %arg6[%c0, %c0_1] : memref<32x128xf32, #tpu.memory_space<vmem>>, vector<32x128xf32>
    %c0_2 = arith.constant 0 : index
    %c0_3 = arith.constant 0 : index
    %4 = vector.load %arg3[%c0_2, %c0_3] : memref<32x144xbf16, #tpu.memory_space<vmem>>, vector<32x144xbf16>
    %c0_4 = arith.constant 0 : index
    %c0_5 = arith.constant 0 : index
    %5 = vector.load %arg4[%c0_4, %c0_5] : memref<144x128xbf16, #tpu.memory_space<vmem>>, vector<144x128xbf16>
    %cst = arith.constant dense<0.000000e+00> : vector<32x128xf32>
    %6 = tpu.matmul %4, %5, %cst {dimension_numbers = #tpu.dot_dimension_numbers<[1], [0], [0], [1], [0, 0, 1, 1], [], []>} : vector<32x144xbf16>, vector<144x128xbf16>, vector<32x128xf32> -> vector<32x128xf32>
    %7 = arith.addf %3, %6 : vector<32x128xf32>
    %c0_6 = arith.constant 0 : index
    %c0_7 = arith.constant 0 : index
    %8 = vector.load %arg6[%c0_6, %c0_7] : memref<32x128xf32, #tpu.memory_space<vmem>>, vector<32x128xf32>
    tpu.vector_store %arg6[%c0_6, %c0_7], %7 {strides = array<i32>} : memref<32x128xf32, #tpu.memory_space<vmem>>, vector<32x128xf32>,
    %c0_i32_8 = arith.constant 0 : i32
    %9 = arith.cmpi eq, %arg2, %c0_i32_8 : i32
    %10 = arith.extui %9 : i1 to i32
    %c0_i32_9 = arith.constant 0 : i32
    %11 = arith.cmpi ne, %10, %c0_i32_9 : i32
    scf.if %11 {
      %c0_10 = arith.constant 0 : index
      %c0_11 = arith.constant 0 : index
      %12 = vector.load %arg6[%c0_10, %c0_11] : memref<32x128xf32, #tpu.memory_space<vmem>>, vector<32x128xf32>
      %c0_12 = arith.constant 0 : index
      %c0_13 = arith.constant 0 : index
      %13 = vector.load %arg5[%c0_12, %c0_13] : memref<32x128xf32, #tpu.memory_space<vmem>>, vector<32x128xf32>
      tpu.vector_store %arg5[%c0_12, %c0_13], %12 {strides = array<i32>} : memref<32x128xf32, #tpu.memory_space<vmem>>, vector<32x128xf32>,
    } else {
    }
    return
  }
  func.func @transform_0(%arg0: i32, %arg1: i32, %arg2: i32) -> (i32, i32) {
    %c0_i32 = arith.constant 0 : i32
    return %arg0, %arg2 : i32, i32
  }
  func.func @transform_1(%arg0: i32, %arg1: i32, %arg2: i32) -> (i32, i32) {
    %c0_i32 = arith.constant 0 : i32
    return %arg2, %arg1 : i32, i32
  }
  func.func @transform_2(%arg0: i32, %arg1: i32, %arg2: i32) -> (i32, i32) {
    %c0_i32 = arith.constant 0 : i32
    return %arg0, %arg1 : i32, i32
  }
}

module attributes {stable_mosaic.version = 11 : i64} {
  func.func @_mm_kernel(%arg0: i32, %arg1: i32, %arg2: i32, %arg3: memref<32x288xbf16, #tpu.memory_space<vmem>>, %arg4: memref<288x128xbf16, #tpu.memory_space<vmem>>, %arg5: memref<32x128xf32, #tpu.memory_space<vmem>>, %arg6: memref<32x128xf32, #tpu.memory_space<vmem>>) attributes {dimension_semantics = [#tpu.dimension_semantics<parallel>, #tpu.dimension_semantics<parallel>, #tpu.dimension_semantics<arbitrary>], iteration_bounds = array<i64: 1, 1, 1>, scalar_prefetch = 0 : i64, scratch_operands = 1 : i64, tpu.core_type = #tpu.core_type<tc>, window_params = [{transform_indices = @transform_0, window_bounds = array<i64: 32, 288>}, {transform_indices = @transform_1, window_bounds = array<i64: 288, 128>}, {transform_indices = @transform_2, window_bounds = array<i64: 32, 128>}]} {
    %c0_i32 = arith.constant 0 : i32
    %0 = arith.cmpi eq, %arg2, %c0_i32 : i32
    %1 = arith.extui %0 : i1 to i32
    %c0_i32_0 = arith.constant 0 : i32
    %2 = arith.cmpi ne, %1, %c0_i32_0 : i32
    scf.if %2 {
      %cst_10 = arith.constant 0.000000e+00 : f32
      %12 = vector.broadcast %cst_10 : f32 to vector<32x128xf32>
      %c0_11 = arith.constant 0 : index
      %c0_12 = arith.constant 0 : index
      %13 = vector.load %arg6[%c0_11, %c0_12] : memref<32x128xf32, #tpu.memory_space<vmem>>, vector<32x128xf32>
      tpu.vector_store %arg6[%c0_11, %c0_12], %12 {strides = array<i32>} : memref<32x128xf32, #tpu.memory_space<vmem>>, vector<32x128xf32>,
    } else {
    }
    %c0 = arith.constant 0 : index
    %c0_1 = arith.constant 0 : index
    %3 = vector.load %arg6[%c0, %c0_1] : memref<32x128xf32, #tpu.memory_space<vmem>>, vector<32x128xf32>
    %c0_2 = arith.constant 0 : index
    %c0_3 = arith.constant 0 : index
    %4 = vector.load %arg3[%c0_2, %c0_3] : memref<32x288xbf16, #tpu.memory_space<vmem>>, vector<32x288xbf16>
    %c0_4 = arith.constant 0 : index
    %c0_5 = arith.constant 0 : index
    %5 = vector.load %arg4[%c0_4, %c0_5] : memref<288x128xbf16, #tpu.memory_space<vmem>>, vector<288x128xbf16>
    %cst = arith.constant dense<0.000000e+00> : vector<32x128xf32>
    %6 = tpu.matmul %4, %5, %cst {dimension_numbers = #tpu.dot_dimension_numbers<[1], [0], [0], [1], [0, 0, 1, 1], [], []>} : vector<32x288xbf16>, vector<288x128xbf16>, vector<32x128xf32> -> vector<32x128xf32>
    %7 = arith.addf %3, %6 : vector<32x128xf32>
    %c0_6 = arith.constant 0 : index
    %c0_7 = arith.constant 0 : index
    %8 = vector.load %arg6[%c0_6, %c0_7] : memref<32x128xf32, #tpu.memory_space<vmem>>, vector<32x128xf32>
    tpu.vector_store %arg6[%c0_6, %c0_7], %7 {strides = array<i32>} : memref<32x128xf32, #tpu.memory_space<vmem>>, vector<32x128xf32>,
    %c0_i32_8 = arith.constant 0 : i32
    %9 = arith.cmpi eq, %arg2, %c0_i32_8 : i32
    %10 = arith.extui %9 : i1 to i32
    %c0_i32_9 = arith.constant 0 : i32
    %11 = arith.cmpi ne, %10, %c0_i32_9 : i32
    scf.if %11 {
      %c0_10 = arith.constant 0 : index
      %c0_11 = arith.constant 0 : index
      %12 = vector.load %arg6[%c0_10, %c0_11] : memref<32x128xf32, #tpu.memory_space<vmem>>, vector<32x128xf32>
      %c0_12 = arith.constant 0 : index
      %c0_13 = arith.constant 0 : index
      %13 = vector.load %arg5[%c0_12, %c0_13] : memref<32x128xf32, #tpu.memory_space<vmem>>, vector<32x128xf32>
      tpu.vector_store %arg5[%c0_12, %c0_13], %12 {strides = array<i32>} : memref<32x128xf32, #tpu.memory_space<vmem>>, vector<32x128xf32>,
    } else {
    }
    return
  }
  func.func @transform_0(%arg0: i32, %arg1: i32, %arg2: i32) -> (i32, i32) {
    %c0_i32 = arith.constant 0 : i32
    return %arg0, %arg2 : i32, i32
  }
  func.func @transform_1(%arg0: i32, %arg1: i32, %arg2: i32) -> (i32, i32) {
    %c0_i32 = arith.constant 0 : i32
    return %arg2, %arg1 : i32, i32
  }
  func.func @transform_2(%arg0: i32, %arg1: i32, %arg2: i32) -> (i32, i32) {
    %c0_i32 = arith.constant 0 : i32
    return %arg0, %arg1 : i32, i32
  }
}

module attributes {stable_mosaic.version = 11 : i64} {
  func.func @_in_res_kernel(%arg0: i32, %arg1: memref<8x16xf32, #tpu.memory_space<vmem>>, %arg2: memref<8x16xf32, #tpu.memory_space<vmem>>, %arg3: memref<8x16xf32, #tpu.memory_space<vmem>>) attributes {dimension_semantics = [#tpu.dimension_semantics<parallel>], iteration_bounds = array<i64: 8>, scalar_prefetch = 0 : i64, scratch_operands = 0 : i64, tpu.core_type = #tpu.core_type<tc>, window_params = [{transform_indices = @transform_0, window_bounds = array<i64: 8, 16>}, {transform_indices = @transform_1, window_bounds = array<i64: 8, 16>}, {transform_indices = @transform_2, window_bounds = array<i64: 8, 16>}]} {
    %c0 = arith.constant 0 : index
    %c0_0 = arith.constant 0 : index
    %0 = vector.load %arg1[%c0, %c0_0] : memref<8x16xf32, #tpu.memory_space<vmem>>, vector<8x16xf32>
    %cst = arith.constant dense<0.000000e+00> : vector<8xf32>
    %1 = vector.multi_reduction <add>, %0, %cst [1] : vector<8x16xf32> to vector<8xf32>
    %2 = vector.shape_cast %1 : vector<8xf32> to vector<8x1xf32>
    %3 = arith.mulf %0, %0 : vector<8x16xf32>
    %cst_1 = arith.constant dense<0.000000e+00> : vector<8xf32>
    %4 = vector.multi_reduction <add>, %3, %cst_1 [1] : vector<8x16xf32> to vector<8xf32>
    %5 = vector.shape_cast %4 : vector<8xf32> to vector<8x1xf32>
    %cst_2 = arith.constant 6.250000e-02 : f32
    %6 = vector.broadcast %cst_2 : f32 to vector<8x1xf32>
    %7 = arith.mulf %2, %6 : vector<8x1xf32>
    %cst_3 = arith.constant 6.250000e-02 : f32
    %8 = vector.broadcast %cst_3 : f32 to vector<8x1xf32>
    %9 = arith.mulf %5, %8 : vector<8x1xf32>
    %10 = arith.mulf %7, %7 : vector<8x1xf32>
    %11 = arith.subf %9, %10 : vector<8x1xf32>
    %cst_4 = arith.constant 0.000000e+00 : f32
    %12 = vector.broadcast %cst_4 : f32 to vector<8x1xf32>
    %13 = arith.maximumf %11, %12 : vector<8x1xf32>
    %14 = vector.broadcast %7 : vector<8x1xf32> to vector<8x16xf32>
    %15 = arith.subf %0, %14 : vector<8x16xf32>
    %cst_5 = arith.constant 9.99999974E-6 : f32
    %16 = vector.broadcast %cst_5 : f32 to vector<8x1xf32>
    %17 = arith.addf %13, %16 : vector<8x1xf32>
    %18 = math.rsqrt %17 : vector<8x1xf32>
    %19 = vector.broadcast %18 : vector<8x1xf32> to vector<8x16xf32>
    %20 = arith.mulf %15, %19 : vector<8x16xf32>
    %c0_6 = arith.constant 0 : index
    %c0_7 = arith.constant 0 : index
    %21 = vector.load %arg2[%c0_6, %c0_7] : memref<8x16xf32, #tpu.memory_space<vmem>>, vector<8x16xf32>
    %22 = arith.addf %21, %20 : vector<8x16xf32>
    %c0_8 = arith.constant 0 : index
    %c0_9 = arith.constant 0 : index
    %23 = vector.load %arg3[%c0_8, %c0_9] : memref<8x16xf32, #tpu.memory_space<vmem>>, vector<8x16xf32>
    tpu.vector_store %arg3[%c0_8, %c0_9], %22 {strides = array<i32>} : memref<8x16xf32, #tpu.memory_space<vmem>>, vector<8x16xf32>,
    return
  }
  func.func @transform_0(%arg0: i32) -> (i32, i32) {
    %c0_i32 = arith.constant 0 : i32
    %c0_i32_0 = arith.constant 0 : i32
    return %arg0, %c0_i32 : i32, i32
  }
  func.func @transform_1(%arg0: i32) -> (i32, i32) {
    %c0_i32 = arith.constant 0 : i32
    %c0_i32_0 = arith.constant 0 : i32
    return %arg0, %c0_i32 : i32, i32
  }
  func.func @transform_2(%arg0: i32) -> (i32, i32) {
    %c0_i32 = arith.constant 0 : i32
    %c0_i32_0 = arith.constant 0 : i32
    return %arg0, %c0_i32 : i32, i32
  }
}

module attributes {stable_mosaic.version = 11 : i64} {
  func.func @_mm_kernel(%arg0: i32, %arg1: i32, %arg2: i32, %arg3: memref<64x128xbf16, #tpu.memory_space<vmem>>, %arg4: memref<128x128xbf16, #tpu.memory_space<vmem>>, %arg5: memref<64x128xf32, #tpu.memory_space<vmem>>, %arg6: memref<64x128xf32, #tpu.memory_space<vmem>>) attributes {dimension_semantics = [#tpu.dimension_semantics<parallel>, #tpu.dimension_semantics<parallel>, #tpu.dimension_semantics<arbitrary>], iteration_bounds = array<i64: 1, 1, 1>, scalar_prefetch = 0 : i64, scratch_operands = 1 : i64, tpu.core_type = #tpu.core_type<tc>, window_params = [{transform_indices = @transform_0, window_bounds = array<i64: 64, 128>}, {transform_indices = @transform_1, window_bounds = array<i64: 128, 128>}, {transform_indices = @transform_2, window_bounds = array<i64: 64, 128>}]} {
    %c0_i32 = arith.constant 0 : i32
    %0 = arith.cmpi eq, %arg2, %c0_i32 : i32
    %1 = arith.extui %0 : i1 to i32
    %c0_i32_0 = arith.constant 0 : i32
    %2 = arith.cmpi ne, %1, %c0_i32_0 : i32
    scf.if %2 {
      %cst_10 = arith.constant 0.000000e+00 : f32
      %12 = vector.broadcast %cst_10 : f32 to vector<64x128xf32>
      %c0_11 = arith.constant 0 : index
      %c0_12 = arith.constant 0 : index
      %13 = vector.load %arg6[%c0_11, %c0_12] : memref<64x128xf32, #tpu.memory_space<vmem>>, vector<64x128xf32>
      tpu.vector_store %arg6[%c0_11, %c0_12], %12 {strides = array<i32>} : memref<64x128xf32, #tpu.memory_space<vmem>>, vector<64x128xf32>,
    } else {
    }
    %c0 = arith.constant 0 : index
    %c0_1 = arith.constant 0 : index
    %3 = vector.load %arg6[%c0, %c0_1] : memref<64x128xf32, #tpu.memory_space<vmem>>, vector<64x128xf32>
    %c0_2 = arith.constant 0 : index
    %c0_3 = arith.constant 0 : index
    %4 = vector.load %arg3[%c0_2, %c0_3] : memref<64x128xbf16, #tpu.memory_space<vmem>>, vector<64x128xbf16>
    %c0_4 = arith.constant 0 : index
    %c0_5 = arith.constant 0 : index
    %5 = vector.load %arg4[%c0_4, %c0_5] : memref<128x128xbf16, #tpu.memory_space<vmem>>, vector<128x128xbf16>
    %cst = arith.constant dense<0.000000e+00> : vector<64x128xf32>
    %6 = tpu.matmul %4, %5, %cst {dimension_numbers = #tpu.dot_dimension_numbers<[1], [0], [0], [1], [0, 0, 1, 1], [], []>} : vector<64x128xbf16>, vector<128x128xbf16>, vector<64x128xf32> -> vector<64x128xf32>
    %7 = arith.addf %3, %6 : vector<64x128xf32>
    %c0_6 = arith.constant 0 : index
    %c0_7 = arith.constant 0 : index
    %8 = vector.load %arg6[%c0_6, %c0_7] : memref<64x128xf32, #tpu.memory_space<vmem>>, vector<64x128xf32>
    tpu.vector_store %arg6[%c0_6, %c0_7], %7 {strides = array<i32>} : memref<64x128xf32, #tpu.memory_space<vmem>>, vector<64x128xf32>,
    %c0_i32_8 = arith.constant 0 : i32
    %9 = arith.cmpi eq, %arg2, %c0_i32_8 : i32
    %10 = arith.extui %9 : i1 to i32
    %c0_i32_9 = arith.constant 0 : i32
    %11 = arith.cmpi ne, %10, %c0_i32_9 : i32
    scf.if %11 {
      %c0_10 = arith.constant 0 : index
      %c0_11 = arith.constant 0 : index
      %12 = vector.load %arg6[%c0_10, %c0_11] : memref<64x128xf32, #tpu.memory_space<vmem>>, vector<64x128xf32>
      %c0_12 = arith.constant 0 : index
      %c0_13 = arith.constant 0 : index
      %13 = vector.load %arg5[%c0_12, %c0_13] : memref<64x128xf32, #tpu.memory_space<vmem>>, vector<64x128xf32>
      tpu.vector_store %arg5[%c0_12, %c0_13], %12 {strides = array<i32>} : memref<64x128xf32, #tpu.memory_space<vmem>>, vector<64x128xf32>,
    } else {
    }
    return
  }
  func.func @transform_0(%arg0: i32, %arg1: i32, %arg2: i32) -> (i32, i32) {
    %c0_i32 = arith.constant 0 : i32
    return %arg0, %arg2 : i32, i32
  }
  func.func @transform_1(%arg0: i32, %arg1: i32, %arg2: i32) -> (i32, i32) {
    %c0_i32 = arith.constant 0 : i32
    return %arg2, %arg1 : i32, i32
  }
  func.func @transform_2(%arg0: i32, %arg1: i32, %arg2: i32) -> (i32, i32) {
    %c0_i32 = arith.constant 0 : i32
    return %arg0, %arg1 : i32, i32
  }
}

module attributes {stable_mosaic.version = 11 : i64} {
  func.func @_mm_kernel(%arg0: i32, %arg1: i32, %arg2: i32, %arg3: memref<32x64xbf16, #tpu.memory_space<vmem>>, %arg4: memref<64x128xbf16, #tpu.memory_space<vmem>>, %arg5: memref<32x128xf32, #tpu.memory_space<vmem>>, %arg6: memref<32x128xf32, #tpu.memory_space<vmem>>) attributes {dimension_semantics = [#tpu.dimension_semantics<parallel>, #tpu.dimension_semantics<parallel>, #tpu.dimension_semantics<arbitrary>], iteration_bounds = array<i64: 1, 1, 1>, scalar_prefetch = 0 : i64, scratch_operands = 1 : i64, tpu.core_type = #tpu.core_type<tc>, window_params = [{transform_indices = @transform_0, window_bounds = array<i64: 32, 64>}, {transform_indices = @transform_1, window_bounds = array<i64: 64, 128>}, {transform_indices = @transform_2, window_bounds = array<i64: 32, 128>}]} {
    %c0_i32 = arith.constant 0 : i32
    %0 = arith.cmpi eq, %arg2, %c0_i32 : i32
    %1 = arith.extui %0 : i1 to i32
    %c0_i32_0 = arith.constant 0 : i32
    %2 = arith.cmpi ne, %1, %c0_i32_0 : i32
    scf.if %2 {
      %cst_10 = arith.constant 0.000000e+00 : f32
      %12 = vector.broadcast %cst_10 : f32 to vector<32x128xf32>
      %c0_11 = arith.constant 0 : index
      %c0_12 = arith.constant 0 : index
      %13 = vector.load %arg6[%c0_11, %c0_12] : memref<32x128xf32, #tpu.memory_space<vmem>>, vector<32x128xf32>
      tpu.vector_store %arg6[%c0_11, %c0_12], %12 {strides = array<i32>} : memref<32x128xf32, #tpu.memory_space<vmem>>, vector<32x128xf32>,
    } else {
    }
    %c0 = arith.constant 0 : index
    %c0_1 = arith.constant 0 : index
    %3 = vector.load %arg6[%c0, %c0_1] : memref<32x128xf32, #tpu.memory_space<vmem>>, vector<32x128xf32>
    %c0_2 = arith.constant 0 : index
    %c0_3 = arith.constant 0 : index
    %4 = vector.load %arg3[%c0_2, %c0_3] : memref<32x64xbf16, #tpu.memory_space<vmem>>, vector<32x64xbf16>
    %c0_4 = arith.constant 0 : index
    %c0_5 = arith.constant 0 : index
    %5 = vector.load %arg4[%c0_4, %c0_5] : memref<64x128xbf16, #tpu.memory_space<vmem>>, vector<64x128xbf16>
    %cst = arith.constant dense<0.000000e+00> : vector<32x128xf32>
    %6 = tpu.matmul %4, %5, %cst {dimension_numbers = #tpu.dot_dimension_numbers<[1], [0], [0], [1], [0, 0, 1, 1], [], []>} : vector<32x64xbf16>, vector<64x128xbf16>, vector<32x128xf32> -> vector<32x128xf32>
    %7 = arith.addf %3, %6 : vector<32x128xf32>
    %c0_6 = arith.constant 0 : index
    %c0_7 = arith.constant 0 : index
    %8 = vector.load %arg6[%c0_6, %c0_7] : memref<32x128xf32, #tpu.memory_space<vmem>>, vector<32x128xf32>
    tpu.vector_store %arg6[%c0_6, %c0_7], %7 {strides = array<i32>} : memref<32x128xf32, #tpu.memory_space<vmem>>, vector<32x128xf32>,
    %c0_i32_8 = arith.constant 0 : i32
    %9 = arith.cmpi eq, %arg2, %c0_i32_8 : i32
    %10 = arith.extui %9 : i1 to i32
    %c0_i32_9 = arith.constant 0 : i32
    %11 = arith.cmpi ne, %10, %c0_i32_9 : i32
    scf.if %11 {
      %c0_10 = arith.constant 0 : index
      %c0_11 = arith.constant 0 : index
      %12 = vector.load %arg6[%c0_10, %c0_11] : memref<32x128xf32, #tpu.memory_space<vmem>>, vector<32x128xf32>
      %c0_12 = arith.constant 0 : index
      %c0_13 = arith.constant 0 : index
      %13 = vector.load %arg5[%c0_12, %c0_13] : memref<32x128xf32, #tpu.memory_space<vmem>>, vector<32x128xf32>
      tpu.vector_store %arg5[%c0_12, %c0_13], %12 {strides = array<i32>} : memref<32x128xf32, #tpu.memory_space<vmem>>, vector<32x128xf32>,
    } else {
    }
    return
  }
  func.func @transform_0(%arg0: i32, %arg1: i32, %arg2: i32) -> (i32, i32) {
    %c0_i32 = arith.constant 0 : i32
    return %arg0, %arg2 : i32, i32
  }
  func.func @transform_1(%arg0: i32, %arg1: i32, %arg2: i32) -> (i32, i32) {
    %c0_i32 = arith.constant 0 : i32
    return %arg2, %arg1 : i32, i32
  }
  func.func @transform_2(%arg0: i32, %arg1: i32, %arg2: i32) -> (i32, i32) {
    %c0_i32 = arith.constant 0 : i32
    return %arg0, %arg1 : i32, i32
  }
}

module attributes {stable_mosaic.version = 11 : i64} {
  func.func @_mm_bias_kernel(%arg0: i32, %arg1: i32, %arg2: i32, %arg3: memref<8x392xbf16, #tpu.memory_space<vmem>>, %arg4: memref<392x512xbf16, #tpu.memory_space<vmem>>, %arg5: memref<8x1xf32, #tpu.memory_space<vmem>>, %arg6: memref<8x512xf32, #tpu.memory_space<vmem>>, %arg7: memref<8x512xf32, #tpu.memory_space<vmem>>) attributes {dimension_semantics = [#tpu.dimension_semantics<parallel>, #tpu.dimension_semantics<parallel>, #tpu.dimension_semantics<arbitrary>], iteration_bounds = array<i64: 1, 1, 1>, scalar_prefetch = 0 : i64, scratch_operands = 1 : i64, tpu.core_type = #tpu.core_type<tc>, window_params = [{transform_indices = @transform_0, window_bounds = array<i64: 8, 392>}, {transform_indices = @transform_1, window_bounds = array<i64: 392, 512>}, {transform_indices = @transform_2, window_bounds = array<i64: 8, 1>}, {transform_indices = @transform_3, window_bounds = array<i64: 8, 512>}]} {
    %c0_i32 = arith.constant 0 : i32
    %0 = arith.cmpi eq, %arg2, %c0_i32 : i32
    %1 = arith.extui %0 : i1 to i32
    %c0_i32_0 = arith.constant 0 : i32
    %2 = arith.cmpi ne, %1, %c0_i32_0 : i32
    scf.if %2 {
      %cst_10 = arith.constant 0.000000e+00 : f32
      %12 = vector.broadcast %cst_10 : f32 to vector<8x512xf32>
      %c0_11 = arith.constant 0 : index
      %c0_12 = arith.constant 0 : index
      %13 = vector.load %arg7[%c0_11, %c0_12] : memref<8x512xf32, #tpu.memory_space<vmem>>, vector<8x512xf32>
      tpu.vector_store %arg7[%c0_11, %c0_12], %12 {strides = array<i32>} : memref<8x512xf32, #tpu.memory_space<vmem>>, vector<8x512xf32>,
    } else {
    }
    %c0 = arith.constant 0 : index
    %c0_1 = arith.constant 0 : index
    %3 = vector.load %arg7[%c0, %c0_1] : memref<8x512xf32, #tpu.memory_space<vmem>>, vector<8x512xf32>
    %c0_2 = arith.constant 0 : index
    %c0_3 = arith.constant 0 : index
    %4 = vector.load %arg3[%c0_2, %c0_3] : memref<8x392xbf16, #tpu.memory_space<vmem>>, vector<8x392xbf16>
    %c0_4 = arith.constant 0 : index
    %c0_5 = arith.constant 0 : index
    %5 = vector.load %arg4[%c0_4, %c0_5] : memref<392x512xbf16, #tpu.memory_space<vmem>>, vector<392x512xbf16>
    %cst = arith.constant dense<0.000000e+00> : vector<8x512xf32>
    %6 = tpu.matmul %4, %5, %cst {dimension_numbers = #tpu.dot_dimension_numbers<[1], [0], [0], [1], [0, 0, 1, 1], [], []>} : vector<8x392xbf16>, vector<392x512xbf16>, vector<8x512xf32> -> vector<8x512xf32>
    %7 = arith.addf %3, %6 : vector<8x512xf32>
    %c0_6 = arith.constant 0 : index
    %c0_7 = arith.constant 0 : index
    %8 = vector.load %arg7[%c0_6, %c0_7] : memref<8x512xf32, #tpu.memory_space<vmem>>, vector<8x512xf32>
    tpu.vector_store %arg7[%c0_6, %c0_7], %7 {strides = array<i32>} : memref<8x512xf32, #tpu.memory_space<vmem>>, vector<8x512xf32>,
    %c0_i32_8 = arith.constant 0 : i32
    %9 = arith.cmpi eq, %arg2, %c0_i32_8 : i32
    %10 = arith.extui %9 : i1 to i32
    %c0_i32_9 = arith.constant 0 : i32
    %11 = arith.cmpi ne, %10, %c0_i32_9 : i32
    scf.if %11 {
      %c0_10 = arith.constant 0 : index
      %c0_11 = arith.constant 0 : index
      %12 = vector.load %arg7[%c0_10, %c0_11] : memref<8x512xf32, #tpu.memory_space<vmem>>, vector<8x512xf32>
      %c0_12 = arith.constant 0 : index
      %c0_13 = arith.constant 0 : index
      %13 = vector.load %arg5[%c0_12, %c0_13] : memref<8x1xf32, #tpu.memory_space<vmem>>, vector<8x1xf32>
      %14 = vector.broadcast %13 : vector<8x1xf32> to vector<8x512xf32>
      %15 = arith.addf %12, %14 : vector<8x512xf32>
      %16 = math.tanh %15 : vector<8x512xf32>
      %c0_14 = arith.constant 0 : index
      %c0_15 = arith.constant 0 : index
      %17 = vector.load %arg6[%c0_14, %c0_15] : memref<8x512xf32, #tpu.memory_space<vmem>>, vector<8x512xf32>
      tpu.vector_store %arg6[%c0_14, %c0_15], %16 {strides = array<i32>} : memref<8x512xf32, #tpu.memory_space<vmem>>, vector<8x512xf32>,
    } else {
    }
    return
  }
  func.func @transform_0(%arg0: i32, %arg1: i32, %arg2: i32) -> (i32, i32) {
    %c0_i32 = arith.constant 0 : i32
    return %arg0, %arg2 : i32, i32
  }
  func.func @transform_1(%arg0: i32, %arg1: i32, %arg2: i32) -> (i32, i32) {
    %c0_i32 = arith.constant 0 : i32
    return %arg2, %arg1 : i32, i32
  }
  func.func @transform_2(%arg0: i32, %arg1: i32, %arg2: i32) -> (i32, i32) {
    %c0_i32 = arith.constant 0 : i32
    %c0_i32_0 = arith.constant 0 : i32
    return %arg0, %c0_i32 : i32, i32
  }
  func.func @transform_3(%arg0: i32, %arg1: i32, %arg2: i32) -> (i32, i32) {
    %c0_i32 = arith.constant 0 : i32
    return %arg0, %arg1 : i32, i32
  }
}

</mosaic_0001>

<bundles_post_ra>
// kernel: generator_forward.24
= control target key start
LH: loop header
LB: loop body
LE: loop exit
PB: predicated region body
PF: predicated region fallthrough
CT: control target
= control target key end

     0   :  { %s238_s6 = smov 0   ;;  %s255_s0 = inlined_call_operand.vmem [shape: f32[16,256], index: 0, kind: input, shape index: {}]   ;;  %s256_s1 = inlined_call_operand.vmem [shape: f32[16,256], index: 1, kind: output, shape index: {}]  }
   0x1 LB: > { %s197_s7 = sadd.s32 4294967295, %s226_s6   ;;  %p201_p0 = scmp.ge.s32.totalorder %s226_s6, 1  ;;  %s226_s6 = sphi %s238_s6, %s11_s6  }
   0x2   : > { %p87_p1 = scmp.lt.s32.totalorder %s226_s6, 3 }
   0x4   : > { %p88_p2 = pnand %p201_p0, %p87_p1 }
   0x5   : > { %p107_p3 = scmp.lt.s32.totalorder (!%p88_p2), %s197_s7, 1 }
   0x6   : > { %91 = sbr.rel (%p88_p2) target bundleno = 189 (0xbd), region = 24 }
   0xd   : > { %s258_s7 = smov (!%p107_p3, %s197_s7), 1 }
   0xe   : > { %s208_s8 = sshll.u32 %s258_s7, 4 }
   0xf   : > { %s111_s11 = scalar_lea.vmem %s255_s0, %s208_s8  ;;  %s116_s14 = scalar_lea.vmem %s256_s1, %s208_s8 }
  0x10   : > { %v117_v0 = vld [vmem:[%s111_s11] sm:$0xff]  ;;  %v118_v1 = vld [vmem:[%s111_s11 + $0x8] sm:$0xff] }
  0x11   : > { %v119_v2 = vadd.f32 %v118_v1, %v117_v0  ;;  %v122_v3 = vmul.f32 %v117_v0, %v117_v0  ;;  %v123_v4 = vmul.f32 %v118_v1, %v118_v1 }
  0x13   : > { %120 = vadd.xlane.f32.xlu0 %v119_v2  ;;  %v124_v5 = vadd.f32 %v123_v4, %v122_v3 }
  0x17   : > { %125 = vadd.xlane.f32.xlu0 %v124_v5 }
  0xa0   : > { %v121_v6 = vpop.xlane.xlu0 %120 }
  0xa1   : > { %v127_v7 = vmul.f32 0.00390625, %v121_v6 }
  0xa3   : > { %v129_v9 = vmul.f32 %v127_v7, %v127_v7  ;;  %v132_v14 = vsub.f32 %v117_v0, %v127_v7  ;;  %v133_v15 = vsub.f32 %v118_v1, %v127_v7 }
  0xa4   : > { %v126_v8 = vpop.xlane.xlu0 %125 }
  0xa5   : > { %v128_v10 = vmul.f32 0.00390625, %v126_v8 }
  0xa7   : > { %v130_v11 = vsub.f32 %v128_v10, %v129_v9 }
  0xa9   : > { %v131_v12 = vmax.f32 %v130_v11, 0.0 }
  0xab   : > { %v134_v13 = vadd.f32 1e-05, %v131_v12 }
  0xad   : > { %218 = vrsqrt.f32 %v134_v13 }
  0xb7   : > { %v219_v16 = vpop.eup %218 }
  0xb8   : > { %v136_v17 = vmul.f32 %v219_v16, %v132_v14  ;;  %v137_v18 = vmul.f32 %v219_v16, %v133_v15 }
  0xba   : > { %v138_v19 = vmax.f32 %v136_v17, 0.0  ;;  %v139_v20 = vmax.f32 %v137_v18, 0.0 }
  0xbc   : > { %140 = vst [vmem:[%s116_s14] sm:$0xff] %v138_v19  ;;  %141 = vst [vmem:[%s116_s14 + $0x8] sm:$0xff] %v139_v20 }
  0xbd PF: > { %s11_s6 = sadd.s32 1, %s226_s6  }
  0xbe   : > { %p8_p4 = scmp.ge.s32.totalorder %s11_s6, 4  }
  0xc0   :  { %10 = sbr.rel (!%p8_p4) target bundleno = 1 (0x1), region = 54 }

// kernel: generator_forward.23
= control target key start
LH: loop header
LB: loop body
LE: loop exit
PB: predicated region body
PF: predicated region fallthrough
CT: control target
= control target key end

     0   :  { %v274_v1 = vmov 0   ;;  %vm113_vm0 = vcmask 1043456   ;;  %vm109_vm1 = vcmask 457728   ;;  %s347_s1 = inlined_call_operand.vmem [shape: bf16[56,512], index: 1, kind: input, shape index: {}]   ;;  %s348_s0 = inlined_call_operand.vmem [shape: bf16[8,56], index: 0, kind: input, shape index: {}]   ;;  %s349_s2 = inlined_call_operand.vmem [shape: f32[8,512], index: 2, kind: output, shape index: {}]  }
   0x1   :  { %v252_v0 = vld [vmem:[%s347_s1 + $0x4] ss:$16 sps:$4 sm:$0xff]   ;;  %158 = vmatprep.mubr.bf16.mxu0 %v274_v1  ;;  %199 = vmatprep.mubr.bf16.mxu1 %v274_v1  ;;  %v254_v2 = vld [vmem:[%s347_s1 + $0xc] ss:$16 sps:$4 sm:$0xff]   ;;  %v256_v3 = vld [vmem:[%s347_s1] ss:$16 sps:$4 sm:$0xff]  }
   0x2   :  { %126 = vmatprep.subr.bf16.mxu0 %v252_v0  ;;  %v257_v4 = vld [vmem:[%s347_s1 + $0x8] ss:$16 sps:$4 sm:$0xff]   ;;  %167 = vmatprep.subr.bf16.mxu1 %v254_v2  ;;  %v258_v5 = vld [vmem:[%s347_s1 + $0x24] ss:$16 sps:$4 sm:$0xff]   ;;  %v260_v6 = vld [vmem:[%s347_s1 + $0x2c] ss:$16 sps:$4 sm:$0xff]  }
   0x3   :  { %127 = vmatpush1.bf16.msra.mxu0 %v256_v3  ;;  %168 = vmatpush1.bf16.msra.mxu1 %v257_v4  ;;  %v262_v7 = vld [vmem:[%s347_s1 + $0x20] ss:$16 sps:$4 sm:$0xff]   ;;  %v263_v8 = vld [vmem:[%s347_s1 + $0x28] ss:$16 sps:$4 sm:$0xff]   ;;  %v264_v9 = vld [vmem:[%s347_s1 + $0x44] ss:$16 sps:$4 sm:$0xff]  }
   0x4   :  { %128 = vmatprep.subr.bf16.mxu0 %v258_v5  ;;  %169 = vmatprep.subr.bf16.mxu1 %v260_v6  ;;  %v266_v10 = vld [vmem:[%s347_s1 + $0x4c] ss:$16 sps:$4 sm:$0xff]   ;;  %v268_v11 = vld [vmem:[%s347_s1 + $0x40] ss:$16 sps:$4 sm:$0xff]   ;;  %v269_v12 = vld [vmem:[%s347_s1 + $0x48] ss:$16 sps:$4 sm:$0xff]  }
   0x5   :  { %v37_v13 = vld [vmem:[%s347_s1 + $0x60] sm:$0xff]  ;;  %v38_v14 = vld [vmem:[%s347_s1 + $0x68] sm:$0xff] }
   0x6   :  { %v244_v15 = vcombine.high %v37_v13, %v37_v13  ;;  %v246_v16 = vcombine.high %v38_v14, %v38_v14  ;;  %v243_v17 = vcombine.low %v37_v13, %v37_v13  ;;  %v245_v18 = vcombine.low %v38_v14, %v38_v14  ;;  %v24_v21 = vld [vmem:[%s348_s0] sm:$0xf] }
   0x7   :  { %129 = vmatpush1.bf16.msra.mxu0 %v262_v7  ;;  %170 = vmatpush1.bf16.msra.mxu1 %v263_v8 }
   0x8   :  { %130 = vmatprep.subr.bf16.mxu0 %v264_v9  ;;  %171 = vmatprep.subr.bf16.mxu1 %v266_v10  ;;  %v115_v19 = vsel %vm113_vm0, %v243_v17, 0  ;;  %v121_v20 = vsel %vm113_vm0, %v245_v18, 0 }
   0xb   :  { %131 = vmatpush1.bf16.msra.mxu0 %v268_v11  ;;  %172 = vmatpush1.bf16.msra.mxu1 %v269_v12 }
   0xc   :  { %247 = vmatprep.subr.msk.bf16.mxu0 %vm113_vm0, %v244_v15  ;;  %249 = vmatprep.subr.msk.bf16.mxu1 %vm113_vm0, %v246_v16 }
   0xf   :  { %133 = vmatpush1.bf16.msra.mxu0 %v115_v19  ;;  %174 = vmatpush1.bf16.msra.mxu1 %v121_v20 }
  0x12   :  { %248 = vmatmul.mubr.msk.bf16.vlgmr.msra.gmra.mrb[0].mxu0 %vm109_vm1, %v24_v21  ;;  %250 = vmatmul.mubr.msk.bf16.vlgmr.msra.gmra.mrb[0].mxu1 %vm109_vm1, %v24_v21 }
  0xe5   :  { %v160_v22 = vpop.f32.mrb[0].mxu0  ;;  %v201_v23 = vpop.f32.mrb[0].mxu1 }
  0xe6   :  { %223 = vst [vmem:[%s349_s2] sm:$0xff] %v160_v22  ;;  %225 = vst [vmem:[%s349_s2 + $0x10] sm:$0xff] %v201_v23  ;;  %v162_v24 = vpop.f32.mrb[1].mxu0  ;;  %v203_v25 = vpop.f32.mrb[1].mxu1 }
  0xe7   :  { %224 = vst [vmem:[%s349_s2 + $0x8] sm:$0xff] %v162_v24  ;;  %226 = vst [vmem:[%s349_s2 + $0x18] sm:$0xff] %v203_v25  ;;  %v164_v26 = vpop.f32.mrb[2].mxu0  ;;  %v205_v27 = vpop.f32.mrb[2].mxu1 }
  0xe8   :  { %v165_v28 = vpop.f32.mrb[3].mxu0  ;;  %v206_v29 = vpop.f32.mrb[3].mxu1 }

// kernel: generator_forward.26
= control target key start
LH: loop header
LB: loop body
LE: loop exit
PB: predicated region body
PF: predicated region fallthrough
CT: control target
= control target key end

     0   :  { %s222_s6 = smov 0   ;;  %s242_s0 = inlined_call_operand.vmem [shape: f32[32,64], index: 0, kind: input, shape index: {}]   ;;  %s243_s1 = inlined_call_operand.vmem [shape: f32[32,64], index: 1, kind: output, shape index: {}]  }
   0x1 LB: > { %s185_s7 = sadd.s32 4294967295, %s210_s6   ;;  %p189_p0 = scmp.ge.s32.totalorder %s210_s6, 1  ;;  %s210_s6 = sphi %s222_s6, %s11_s6  }
   0x2   : > { %p86_p1 = scmp.lt.s32.totalorder %s210_s6, 5 }
   0x4   : > { %p87_p2 = pnand %p189_p0, %p86_p1 }
   0x5   : > { %p104_p3 = scmp.lt.s32.totalorder (!%p87_p2), %s185_s7, 3  ;;  %vm113_vm0 = vcmask (!%p87_p2), 523264  }
   0x6   : > { %90 = sbr.rel (%p87_p2) target bundleno = 188 (0xbc), region = 24 }
   0xd   : > { %s245_s7 = smov (!%p104_p3, %s185_s7), 3 }
   0xe   : > { %s190_s8 = sshll.u32 %s245_s7, 3 }
   0xf   : > { %s107_s11 = scalar_lea.vmem %s242_s0, %s190_s8  ;;  %s111_s14 = scalar_lea.vmem %s243_s1, %s190_s8 }
  0x10   : > { %v112_v0 = vld [vmem:[%s107_s11] sm:$0xff] }
  0x11   : > { %v114_v1 = vsel %vm113_vm0, %v112_v0, 0.0  ;;  %v117_v2 = vmul.f32 %v112_v0, %v112_v0 }
  0x12   : > { %115 = vadd.xlane.f32.xlu0 %v114_v1 }
  0x13   : > { %v118_v3 = vsel %vm113_vm0, %v117_v2, 0.0 }
  0x16   : > { %119 = vadd.xlane.f32.xlu0 %v118_v3 }
  0x9f   : > { %v116_v4 = vpop.xlane.xlu0 %115 }
  0xa0   : > { %v121_v5 = vmul.f32 0.015625, %v116_v4 }
  0xa2   : > { %v123_v7 = vmul.f32 %v121_v5, %v121_v5  ;;  %v126_v12 = vsub.f32 %v112_v0, %v121_v5 }
  0xa3   : > { %v120_v6 = vpop.xlane.xlu0 %119 }
  0xa4   : > { %v122_v8 = vmul.f32 0.015625, %v120_v6 }
  0xa6   : > { %v124_v9 = vsub.f32 %v122_v8, %v123_v7 }
  0xa8   : > { %v125_v10 = vmax.f32 %v124_v9, 0.0 }
  0xaa   : > { %v127_v11 = vadd.f32 1e-05, %v125_v10 }
  0xac   : > { %202 = vrsqrt.f32 %v127_v11 }
  0xb6   : > { %v203_v13 = vpop.eup %202 }
  0xb7   : > { %v129_v14 = vmul.f32 %v203_v13, %v126_v12 }
  0xb9   : > { %v130_v15 = vmax.f32 %v129_v14, 0.0 }
  0xbb   : > { %131 = vst.msk [vmem:[%s111_s14] sm:$0xff] %vm113_vm0, %v130_v15 }
  0xbc PF: > { %s11_s6 = sadd.s32 1, %s210_s6  }
  0xbd   : > { %p8_p4 = scmp.ge.s32.totalorder %s11_s6, 6  }
  0xbf   :  { %10 = sbr.rel (!%p8_p4) target bundleno = 1 (0x1), region = 54 }

// kernel: generator_forward.25
= control target key start
LH: loop header
LB: loop body
LE: loop exit
PB: predicated region body
PF: predicated region fallthrough
CT: control target
= control target key end

     0   :  { %v162_v0 = vmov 0.0   ;;  %vm163_vm0 = vmmov 0   ;;  %vm67_vm1 = vcmask 1043456   ;;  %vm63_vm2 = vcmask 588800   ;;  %s203_s1 = inlined_call_operand.vmem [shape: bf16[72,128], index: 1, kind: input, shape index: {}]   ;;  %s204_s0 = inlined_call_operand.vmem [shape: bf16[16,72], index: 0, kind: input, shape index: {}]   ;;  %s205_s2 = inlined_call_operand.vmem [shape: f32[16,128], index: 2, kind: output, shape index: {}]  }
   0x1   :  { %140 = vmatprep.subr.bf16.mxu0 %v162_v0  ;;  %v156_v1 = vld [vmem:[%s203_s1] sm:$0xff]   ;;  %150 = vmatprep.mubr.msk.bf16.mxu0 %vm163_vm0, %v162_v0  ;;  %v157_v2 = vld [vmem:[%s203_s1 + $0x8] sm:$0xff]   ;;  %v158_v3 = vld [vmem:[%s203_s1 + $0x10] sm:$0xff]  }
   0x2   :  { %141 = vmatpush3.bf16.msra.mxu0 %v156_v1  ;;  %v159_v4 = vld [vmem:[%s203_s1 + $0x18] sm:$0xff]   ;;  %v160_v5 = vld [vmem:[%s203_s1 + $0x20] ss:$0 sps:$4 sm:$0xff]  }
   0x3   :  { %142 = vmatprep.subr.bf16.mxu0 %v162_v0  ;;  %v69_v6 = vsel %vm67_vm1, %v160_v5, 0  ;;  %v161_v7 = vld [vmem:[%s204_s0] sm:$0xff]  }
   0x6   :  { %143 = vmatpush3.bf16.msra.mxu0 %v157_v2 }
   0x7   :  { %144 = vmatprep.subr.bf16.mxu0 %v162_v0 }
   0xa   :  { %145 = vmatpush3.bf16.msra.mxu0 %v158_v3 }
   0xb   :  { %146 = vmatprep.subr.bf16.mxu0 %v162_v0 }
   0xe   :  { %147 = vmatpush3.bf16.msra.mxu0 %v159_v4 }
   0xf   :  { %148 = vmatprep.subr.bf16.mxu0 %v162_v0 }
  0x12   :  { %149 = vmatpush3.bf16.msra.mxu0 %v69_v6 }
  0x15   :  { %151 = vmatmul.mubr.msk.bf16.vlgmr.msra.gmra.mrb[0].mxu0 %vm63_vm2, %v161_v7 }
  0xe8   :  { %v105_v8 = vpop.f32.mrb[0].mxu0 }
  0xe9   :  { %121 = vst [vmem:[%s205_s2] sm:$0xff] %v105_v8  ;;  %v152_v9 = vpop.f32.mrb[1].mxu0 }
  0xea   :  { %v108_v10 = vpop.f32.mrb[2].mxu0 }
  0xeb   :  { %122 = vst [vmem:[%s205_s2 + $0x8] sm:$0xff] %v108_v10  ;;  %v153_v11 = vpop.f32.mrb[3].mxu0 }

// kernel: generator_forward.28
= control target key start
LH: loop header
LB: loop body
LE: loop exit
PB: predicated region body
PF: predicated region fallthrough
CT: control target
= control target key end

     0   :  { %s222_s6 = smov 0   ;;  %s242_s0 = inlined_call_operand.vmem [shape: f32[64,16], index: 0, kind: input, shape index: {}]   ;;  %s243_s1 = inlined_call_operand.vmem [shape: f32[64,16], index: 1, kind: output, shape index: {}]  }
   0x1 LB: > { %s185_s7 = sadd.s32 4294967295, %s210_s6   ;;  %p189_p0 = scmp.ge.s32.totalorder %s210_s6, 1  ;;  %s210_s6 = sphi %s222_s6, %s11_s6  }
   0x2   : > { %p86_p1 = scmp.lt.s32.totalorder %s210_s6, 9 }
   0x4   : > { %p87_p2 = pnand %p189_p0, %p86_p1 }
   0x5   : > { %p104_p3 = scmp.lt.s32.totalorder (!%p87_p2), %s185_s7, 7  ;;  %vm113_vm0 = vcmask (!%p87_p2), 130048  }
   0x6   : > { %90 = sbr.rel (%p87_p2) target bundleno = 188 (0xbc), region = 24 }
   0xd   : > { %s245_s7 = smov (!%p104_p3, %s185_s7), 7 }
   0xe   : > { %s190_s8 = sshll.u32 %s245_s7, 3 }
   0xf   : > { %s107_s11 = scalar_lea.vmem %s242_s0, %s190_s8  ;;  %s111_s14 = scalar_lea.vmem %s243_s1, %s190_s8 }
  0x10   : > { %v112_v0 = vld [vmem:[%s107_s11] sm:$0xff] }
  0x11   : > { %v114_v1 = vsel %vm113_vm0, %v112_v0, 0.0  ;;  %v117_v2 = vmul.f32 %v112_v0, %v112_v0 }
  0x12   : > { %115 = vadd.xlane.f32.xlu0 %v114_v1 }
  0x13   : > { %v118_v3 = vsel %vm113_vm0, %v117_v2, 0.0 }
  0x16   : > { %119 = vadd.xlane.f32.xlu0 %v118_v3 }
  0x9f   : > { %v116_v4 = vpop.xlane.xlu0 %115 }
  0xa0   : > { %v121_v5 = vmul.f32 0.0625, %v116_v4 }
  0xa2   : > { %v123_v7 = vmul.f32 %v121_v5, %v121_v5  ;;  %v126_v12 = vsub.f32 %v112_v0, %v121_v5 }
  0xa3   : > { %v120_v6 = vpop.xlane.xlu0 %119 }
  0xa4   : > { %v122_v8 = vmul.f32 0.0625, %v120_v6 }
  0xa6   : > { %v124_v9 = vsub.f32 %v122_v8, %v123_v7 }
  0xa8   : > { %v125_v10 = vmax.f32 %v124_v9, 0.0 }
  0xaa   : > { %v127_v11 = vadd.f32 1e-05, %v125_v10 }
  0xac   : > { %202 = vrsqrt.f32 %v127_v11 }
  0xb6   : > { %v203_v13 = vpop.eup %202 }
  0xb7   : > { %v129_v14 = vmul.f32 %v203_v13, %v126_v12 }
  0xb9   : > { %v130_v15 = vmax.f32 %v129_v14, 0.0 }
  0xbb   : > { %131 = vst.msk [vmem:[%s111_s14] sm:$0xff] %vm113_vm0, %v130_v15 }
  0xbc PF: > { %s11_s6 = sadd.s32 1, %s210_s6  }
  0xbd   : > { %p8_p4 = scmp.ge.s32.totalorder %s11_s6, 10  }
  0xbf   :  { %10 = sbr.rel (!%p8_p4) target bundleno = 1 (0x1), region = 54 }

// kernel: generator_forward.27
= control target key start
LH: loop header
LB: loop body
LE: loop exit
PB: predicated region body
PF: predicated region fallthrough
CT: control target
= control target key end

     0   :  { %v246_v0 = vmov 0   ;;  %vm118_vm0 = vcmask 130048   ;;  %s313_s1 = inlined_call_operand.vmem [shape: bf16[144,128], index: 1, kind: input, shape index: {}]   ;;  %s314_s0 = inlined_call_operand.vmem [shape: bf16[32,144], index: 0, kind: input, shape index: {}]   ;;  %s315_s2 = inlined_call_operand.vmem [shape: f32[32,128], index: 2, kind: output, shape index: {}]  }
   0x1   :  { %125 = vmatprep.subr.bf16.mxu0 %v246_v0  ;;  %212 = vmatprep.subr.bf16.mxu1 %v246_v0  ;;  %v231_v1 = vld [vmem:[%s313_s1] sm:$0xff]   ;;  %v232_v2 = vld [vmem:[%s313_s1 + $0x8] sm:$0xff]   ;;  %v233_v3 = vld [vmem:[%s313_s1 + $0x10] sm:$0xff]  }
   0x2   :  { %126 = vmatpush1.bf16.msra.mxu0 %v231_v1  ;;  %221 = vmatpush1.bf16.msra.mxu1 %v231_v1  ;;  %v234_v4 = vld [vmem:[%s313_s1 + $0x18] sm:$0xff]   ;;  %v242_v5 = vld [vmem:[%s314_s0 + $0x4] ss:$8 sps:$4 sm:$0xff]   ;;  %v237_v9 = vld [vmem:[%s313_s1 + $0x30] sm:$0xff]  }
   0x3   :  { %127 = vmatprep.subr.bf16.mxu0 %v246_v0  ;;  %213 = vmatprep.subr.bf16.mxu1 %v246_v0  ;;  %v245_v6 = vld [vmem:[%s314_s0 + $0x14] ss:$8 sps:$4 sm:$0xff]   ;;  %v235_v7 = vld [vmem:[%s313_s1 + $0x20] sm:$0xff]   ;;  %v236_v8 = vld [vmem:[%s313_s1 + $0x28] sm:$0xff]  }
   0x4   :  { %210 = vmatprep.mubr.msk.bf16.mxu0 %vm118_vm0, %v242_v5  ;;  %211 = vmatprep.mubr.msk.bf16.mxu1 %vm118_vm0, %v245_v6  ;;  %v238_v10 = vld [vmem:[%s313_s1 + $0x38] sm:$0xff]   ;;  %v239_v11 = vld [vmem:[%s313_s1 + $0x40] sm:$0xff]  }
   0x5   :  { %v240_v12 = vld [vmem:[%s314_s0] ss:$8 sps:$4 sm:$0xff]   ;;  %v243_v13 = vld [vmem:[%s314_s0 + $0x10] ss:$8 sps:$4 sm:$0xff]  }
   0x6   :  { %128 = vmatpush1.bf16.msra.mxu0 %v232_v2  ;;  %222 = vmatpush1.bf16.msra.mxu1 %v232_v2 }
   0x7   :  { %129 = vmatprep.subr.bf16.mxu0 %v246_v0  ;;  %214 = vmatprep.subr.bf16.mxu1 %v246_v0 }
   0xa   :  { %130 = vmatpush1.bf16.msra.mxu0 %v233_v3  ;;  %223 = vmatpush1.bf16.msra.mxu1 %v233_v3 }
   0xb   :  { %131 = vmatprep.subr.bf16.mxu0 %v246_v0  ;;  %215 = vmatprep.subr.bf16.mxu1 %v246_v0 }
   0xe   :  { %132 = vmatpush1.bf16.msra.mxu0 %v234_v4  ;;  %224 = vmatpush1.bf16.msra.mxu1 %v234_v4 }
   0xf   :  { %133 = vmatprep.subr.bf16.mxu0 %v246_v0  ;;  %216 = vmatprep.subr.bf16.mxu1 %v246_v0 }
  0x12   :  { %134 = vmatpush1.bf16.msra.mxu0 %v235_v7  ;;  %225 = vmatpush1.bf16.msra.mxu1 %v235_v7 }
  0x13   :  { %135 = vmatprep.subr.bf16.mxu0 %v246_v0  ;;  %217 = vmatprep.subr.bf16.mxu1 %v246_v0 }
  0x16   :  { %136 = vmatpush1.bf16.msra.mxu0 %v236_v8  ;;  %226 = vmatpush1.bf16.msra.mxu1 %v236_v8 }
  0x17   :  { %137 = vmatprep.subr.bf16.mxu0 %v246_v0  ;;  %218 = vmatprep.subr.bf16.mxu1 %v246_v0 }
  0x1a   :  { %138 = vmatpush1.bf16.msra.mxu0 %v237_v9  ;;  %227 = vmatpush1.bf16.msra.mxu1 %v237_v9 }
  0x1b   :  { %139 = vmatprep.subr.bf16.mxu0 %v246_v0  ;;  %219 = vmatprep.subr.bf16.mxu1 %v246_v0 }
  0x1e   :  { %140 = vmatpush1.bf16.msra.mxu0 %v238_v10  ;;  %228 = vmatpush1.bf16.msra.mxu1 %v238_v10 }
  0x1f   :  { %141 = vmatprep.subr.bf16.mxu0 %v246_v0  ;;  %220 = vmatprep.subr.bf16.mxu1 %v246_v0 }
  0x22   :  { %142 = vmatpush1.bf16.msra.mxu0 %v239_v11  ;;  %229 = vmatpush1.bf16.msra.mxu1 %v239_v11 }
  0x25   :  { %158 = vmatmul.mubr.bf16.vlgmr.msra.gmra.mrb[0].mxu0 %v240_v12  ;;  %166 = vmatmul.mubr.bf16.vlgmr.msra.gmra.mrb[0].mxu1 %v243_v13 }
  0xf8   :  { %v159_v14 = vpop.f32.mrb[0].mxu0  ;;  %v167_v15 = vpop.f32.mrb[0].mxu1 }
  0xf9   :  { %189 = vst [vmem:[%s315_s2] sm:$0xff] %v159_v14  ;;  %191 = vst [vmem:[%s315_s2 + $0x10] sm:$0xff] %v167_v15  ;;  %v161_v16 = vpop.f32.mrb[1].mxu0  ;;  %v169_v17 = vpop.f32.mrb[1].mxu1 }
  0xfa   :  { %v162_v18 = vpop.f32.mrb[2].mxu0  ;;  %v170_v19 = vpop.f32.mrb[2].mxu1 }
  0xfb   :  { %190 = vst [vmem:[%s315_s2 + $0x8] sm:$0xff] %v162_v18  ;;  %192 = vst [vmem:[%s315_s2 + $0x18] sm:$0xff] %v170_v19  ;;  %v164_v20 = vpop.f32.mrb[3].mxu0  ;;  %v172_v21 = vpop.f32.mrb[3].mxu1 }

// kernel: generator_forward.29
= control target key start
LH: loop header
LB: loop body
LE: loop exit
PB: predicated region body
PF: predicated region fallthrough
CT: control target
= control target key end

     0   :  { %vm206_vm0 = vcmask 261120   ;;  %s525_s1 = inlined_call_operand.vmem [shape: bf16[288,128], index: 1, kind: input, shape index: {}]   ;;  %s526_s0 = inlined_call_operand.vmem [shape: bf16[32,288], index: 0, kind: input, shape index: {}]   ;;  %s527_s2 = inlined_call_operand.vmem [shape: f32[32,128], index: 2, kind: output, shape index: {}]  }
   0x1   :  { %v400_v0 = vld [vmem:[%s525_s1 + $0x40] sm:$0xff]   ;;  %v402_v2 = vld [vmem:[%s525_s1 + $0x48] sm:$0xff]   ;;  %v404_v4 = vld [vmem:[%s525_s1 + $0x50] sm:$0xff]  }
   0x2   :  { %v401_v1 = vld [vmem:[%s525_s1] sm:$0xff]   ;;  %360 = vmatprep.subr.bf16.mxu0 %v400_v0  ;;  %v403_v3 = vld [vmem:[%s525_s1 + $0x8] sm:$0xff]   ;;  %v405_v5 = vld [vmem:[%s525_s1 + $0x10] sm:$0xff]  }
   0x3   :  { %361 = vmatpush3.bf16.msra.mxu0 %v401_v1  ;;  %v406_v6 = vld [vmem:[%s525_s1 + $0x58] sm:$0xff]   ;;  %v408_v8 = vld [vmem:[%s525_s1 + $0x60] sm:$0xff]   ;;  %v410_v11 = vld [vmem:[%s525_s1 + $0x68] sm:$0xff]  }
   0x4   :  { %362 = vmatprep.subr.bf16.mxu0 %v402_v2  ;;  %v407_v7 = vld [vmem:[%s525_s1 + $0x18] sm:$0xff]   ;;  %v414_v9 = vld [vmem:[%s525_s1 + $0x80] sm:$0xff]   ;;  %v411_v12 = vld [vmem:[%s525_s1 + $0x28] sm:$0xff]  }
   0x5   :  { %v409_v10 = vld [vmem:[%s525_s1 + $0x20] sm:$0xff]   ;;  %392 = vmatprep.subr.bf16.mxu1 %v414_v9  ;;  %v417_v13 = vld [vmem:[%s525_s1 + $0x88] sm:$0xff]   ;;  %v412_v14 = vld [vmem:[%s525_s1 + $0x70] sm:$0xff]  }
   0x6   :  { %393 = vmatpush3.bf16.msra.mxu1 %v414_v9  ;;  %v420_v15 = vld [vmem:[%s526_s0 + $0x4] ss:$12 sps:$4 sm:$0xff]   ;;  %v421_v16 = vld [vmem:[%s526_s0 + $0x8] ss:$12 sps:$4 sm:$0xff]   ;;  %v422_v17 = vld [vmem:[%s526_s0 + $0x20] ss:$12 sps:$4 sm:$0xff]  }
   0x7   :  { %363 = vmatpush3.bf16.msra.mxu0 %v403_v3  ;;  %394 = vmatprep.subr.bf16.mxu1 %v417_v13  ;;  %v413_v18 = vld [vmem:[%s525_s1 + $0x30] sm:$0xff]   ;;  %v415_v19 = vld [vmem:[%s525_s1 + $0x78] sm:$0xff]   ;;  %v418_v21 = vld [vmem:[%s526_s0] ss:$12 sps:$4 sm:$0xff]  }
   0x8   :  { %364 = vmatprep.subr.bf16.mxu0 %v404_v4  ;;  %245 = vmatprep.mubr.bf16.mxu0 %v420_v15  ;;  %v416_v20 = vld [vmem:[%s525_s1 + $0x38] sm:$0xff]  }
   0x9   :  { %396 = vmatprep.mubr.msk.bf16.mxu1 %vm206_vm0, %v421_v16  ;;  %v423_v22 = vld [vmem:[%s526_s0 + $0x1c] ss:$12 sps:$4 sm:$0xff]   ;;  %v425_v23 = vld [vmem:[%s526_s0 + $0x18] ss:$12 sps:$4 sm:$0xff]  }
   0xa   :  { %395 = vmatpush3.bf16.msra.mxu1 %v417_v13 }
   0xb   :  { %365 = vmatpush3.bf16.msra.mxu0 %v405_v5 }
   0xc   :  { %366 = vmatprep.subr.bf16.mxu0 %v406_v6 }
   0xd   :  { %397 = vmatmul.mubr.msk.bf16.vlgmr.msra.gmra.mrb[0].mxu1 %vm206_vm0, %v422_v17 }
   0xf   :  { %367 = vmatpush3.bf16.msra.mxu0 %v407_v7 }
  0x10   :  { %368 = vmatprep.subr.bf16.mxu0 %v408_v8 }
  0x13   :  { %369 = vmatpush3.bf16.msra.mxu0 %v409_v10 }
  0x14   :  { %370 = vmatprep.subr.bf16.mxu0 %v410_v11 }
  0x17   :  { %371 = vmatpush3.bf16.msra.mxu0 %v411_v12 }
  0x18   :  { %372 = vmatprep.subr.bf16.mxu0 %v412_v14 }
  0x1b   :  { %373 = vmatpush3.bf16.msra.mxu0 %v413_v18 }
  0x1c   :  { %374 = vmatprep.subr.bf16.mxu0 %v415_v19 }
  0x1f   :  { %375 = vmatpush3.bf16.msra.mxu0 %v416_v20 }
  0x22   :  { %246 = vmatmul.mubr.bf16.vlgmr.msra.gmra.mrb[0].mxu0 %v418_v21 }
  0x23   :  { %253 = vmatprep.mubr.bf16.mxu0 %v423_v22 }
  0x2a   :  { %254 = vmatmul.mubr.bf16.gmra.mrb[4].mxu0 %v425_v23 }
  0xe0   :  { %v398_v24 = vpop.f32.mrb[0].mxu1 }
  0xe1   :  { %v296_v25 = vpop.f32.mrb[1].mxu1 }
  0xe2   :  { %v399_v26 = vpop.f32.mrb[2].mxu1 }
  0xe3   :  { %v299_v27 = vpop.f32.mrb[3].mxu1 }
  0xf5   :  { %v376_v28 = vpop.f32.mrb[0].mxu0 }
  0xf6   :  { %v377_v29 = vpop.f32.mrb[1].mxu0 }
  0xf7   :  { %v378_v30 = vadd.f32 %v377_v29, %v376_v28  ;;  %v379_v31 = vpop.f32.mrb[2].mxu0 }
  0xf8   :  { %v380_v32 = vpop.f32.mrb[3].mxu0 }
  0xf9   :  { %v381_v33 = vadd.f32 %v380_v32, %v379_v31  ;;  %v297_v34 = vadd.f32 %v378_v30, %v296_v25 }
  0xfb   :  { %326 = vst [vmem:[%s527_s2] sm:$0xff] %v297_v34  ;;  %v300_v35 = vadd.f32 %v381_v33, %v299_v27 }
  0xfd   :  { %327 = vst [vmem:[%s527_s2 + $0x8] sm:$0xff] %v300_v35  ;;  %v382_v36 = vpop.f32.mrb[4].mxu0 }
  0xfe   :  { %v383_v37 = vpop.f32.mrb[5].mxu0 }
  0xff   :  { %v384_v38 = vadd.f32 %v383_v37, %v382_v36  ;;  %v385_v39 = vpop.f32.mrb[6].mxu0 }
 0x100   :  { %v386_v40 = vpop.f32.mrb[7].mxu0 }
 0x101   :  { %v305_v41 = vadd.f32 %v398_v24, %v384_v38  ;;  %v387_v42 = vadd.f32 %v386_v40, %v385_v39 }
 0x103   :  { %328 = vst [vmem:[%s527_s2 + $0x10] sm:$0xff] %v305_v41  ;;  %v308_v43 = vadd.f32 %v399_v26, %v387_v42 }
 0x105   :  { %329 = vst [vmem:[%s527_s2 + $0x18] sm:$0xff] %v308_v43 }

// kernel: generator_forward.32
= control target key start
LH: loop header
LB: loop body
LE: loop exit
PB: predicated region body
PF: predicated region fallthrough
CT: control target
= control target key end

     0   :  { %s285_s9 = smov 0   ;;  %s308_s0 = inlined_call_operand.vmem [shape: f32[64,16], index: 0, kind: input, shape index: {}]   ;;  %s309_s1 = inlined_call_operand.vmem [shape: f32[64,16], index: 1, kind: input, shape index: {}]   ;;  %s310_s2 = inlined_call_operand.vmem [shape: f32[64,16], index: 2, kind: output, shape index: {}]  }
   0x1 LB: > { %s242_s10 = sadd.s32 4294967295, %s268_s9   ;;  %p246_p0 = scmp.ge.s32.totalorder %s268_s9, 1  ;;  %s268_s9 = sphi %s285_s9, %s12_s9  }
   0x2   : > { %p120_p1 = scmp.lt.s32.totalorder %s268_s9, 9 }
   0x4   : > { %p121_p2 = pnand %p246_p0, %p120_p1 }
   0x5   : > { %p144_p3 = scmp.lt.s32.totalorder (!%p121_p2), %s242_s10, 7  ;;  %vm157_vm0 = vcmask (!%p121_p2), 130048  }
   0x6   : > { %124 = sbr.rel (%p121_p2) target bundleno = 188 (0xbc), region = 28 }
   0xd   : > { %s312_s10 = smov (!%p144_p3, %s242_s10), 7 }
   0xe   : > { %s247_s11 = sshll.u32 %s312_s10, 3 }
   0xf   : > { %s147_s14 = scalar_lea.vmem %s308_s0, %s247_s11  ;;  %s151_s17 = scalar_lea.vmem %s309_s1, %s247_s11 }
  0x10   : > { %v156_v0 = vld [vmem:[%s147_s14] sm:$0xff]  ;;  %s155_s20 = scalar_lea.vmem %s310_s2, %s247_s11 }
  0x11   : > { %v158_v1 = vsel %vm157_vm0, %v156_v0, 0.0  ;;  %v161_v2 = vmul.f32 %v156_v0, %v156_v0  ;;  %v174_v14 = vld [vmem:[%s151_s17] sm:$0xff] }
  0x12   : > { %159 = vadd.xlane.f32.xlu0 %v158_v1 }
  0x13   : > { %v162_v3 = vsel %vm157_vm0, %v161_v2, 0.0 }
  0x16   : > { %163 = vadd.xlane.f32.xlu0 %v162_v3 }
  0x9f   : > { %v160_v4 = vpop.xlane.xlu0 %159 }
  0xa0   : > { %v165_v5 = vmul.f32 0.0625, %v160_v4 }
  0xa2   : > { %v167_v7 = vmul.f32 %v165_v5, %v165_v5  ;;  %v170_v12 = vsub.f32 %v156_v0, %v165_v5 }
  0xa3   : > { %v164_v6 = vpop.xlane.xlu0 %163 }
  0xa4   : > { %v166_v8 = vmul.f32 0.0625, %v164_v6 }
  0xa6   : > { %v168_v9 = vsub.f32 %v166_v8, %v167_v7 }
  0xa8   : > { %v169_v10 = vmax.f32 %v168_v9, 0.0 }
  0xaa   : > { %v171_v11 = vadd.f32 1e-05, %v169_v10 }
  0xac   : > { %260 = vrsqrt.f32 %v171_v11 }
  0xb6   : > { %v261_v13 = vpop.eup %260 }
  0xb7   : > { %v173_v15 = vmul.f32 %v261_v13, %v170_v12 }
  0xb9   : > { %v175_v16 = vadd.f32 %v174_v14, %v173_v15 }
  0xbb   : > { %176 = vst.msk [vmem:[%s155_s20] sm:$0xff] %vm157_vm0, %v175_v16 }
  0xbc PF: > { %s12_s9 = sadd.s32 1, %s268_s9  }
  0xbd   : > { %p9_p4 = scmp.ge.s32.totalorder %s12_s9, 10  }
  0xbf   :  { %11 = sbr.rel (!%p9_p4) target bundleno = 1 (0x1), region = 61 }

// kernel: generator_forward.41
= control target key start
LH: loop header
LB: loop body
LE: loop exit
PB: predicated region body
PF: predicated region fallthrough
CT: control target
= control target key end

     0   :  { %s383_s1 = inlined_call_operand.vmem [shape: bf16[128,128], index: 1, kind: input, shape index: {}]   ;;  %s384_s0 = inlined_call_operand.vmem [shape: bf16[64,128], index: 0, kind: input, shape index: {}]   ;;  %s385_s2 = inlined_call_operand.vmem [shape: f32[64,128], index: 2, kind: output, shape index: {}]  }
   0x1   :  { %v296_v0 = vld [vmem:[%s383_s1] sm:$0xff]   ;;  %v297_v1 = vld [vmem:[%s383_s1 + $0x8] sm:$0xff]   ;;  %v298_v2 = vld [vmem:[%s383_s1 + $0x10] sm:$0xff]  }
   0x2   :  { %256 = vmatprep.subr.bf16.mxu0 %v296_v0  ;;  %280 = vmatprep.subr.bf16.mxu1 %v296_v0  ;;  %v299_v3 = vld [vmem:[%s383_s1 + $0x18] sm:$0xff]   ;;  %v304_v4 = vld [vmem:[%s384_s0] sm:$0xff]   ;;  %v305_v5 = vld [vmem:[%s384_s0 + $0x10] sm:$0xff]  }
   0x3   :  { %257 = vmatpush3.bf16.msra.mxu0 %v296_v0  ;;  %288 = vmatpush3.bf16.msra.mxu1 %v296_v0  ;;  %v300_v6 = vld [vmem:[%s383_s1 + $0x20] sm:$0xff]   ;;  %v301_v7 = vld [vmem:[%s383_s1 + $0x28] sm:$0xff]   ;;  %v302_v8 = vld [vmem:[%s383_s1 + $0x30] sm:$0xff]  }
   0x4   :  { %258 = vmatprep.subr.bf16.mxu0 %v297_v1  ;;  %281 = vmatprep.subr.bf16.mxu1 %v297_v1  ;;  %v303_v9 = vld [vmem:[%s383_s1 + $0x38] sm:$0xff]   ;;  %v306_v10 = vld [vmem:[%s384_s0 + $0x8] sm:$0xff]  }
   0x5   :  { %272 = vmatprep.mubr.bf16.mxu0 %v304_v4  ;;  %276 = vmatprep.mubr.bf16.mxu1 %v305_v5  ;;  %v307_v11 = vld [vmem:[%s384_s0 + $0x18] sm:$0xff]  }
   0x7   :  { %259 = vmatpush3.bf16.msra.mxu0 %v297_v1  ;;  %289 = vmatpush3.bf16.msra.mxu1 %v297_v1 }
   0x8   :  { %260 = vmatprep.subr.bf16.mxu0 %v298_v2  ;;  %282 = vmatprep.subr.bf16.mxu1 %v298_v2 }
   0xb   :  { %261 = vmatpush3.bf16.msra.mxu0 %v298_v2  ;;  %290 = vmatpush3.bf16.msra.mxu1 %v298_v2 }
   0xc   :  { %262 = vmatprep.subr.bf16.mxu0 %v299_v3  ;;  %283 = vmatprep.subr.bf16.mxu1 %v299_v3 }
   0xf   :  { %263 = vmatpush3.bf16.msra.mxu0 %v299_v3  ;;  %291 = vmatpush3.bf16.msra.mxu1 %v299_v3 }
  0x10   :  { %264 = vmatprep.subr.bf16.mxu0 %v300_v6  ;;  %284 = vmatprep.subr.bf16.mxu1 %v300_v6 }
  0x13   :  { %265 = vmatpush3.bf16.msra.mxu0 %v300_v6  ;;  %292 = vmatpush3.bf16.msra.mxu1 %v300_v6 }
  0x14   :  { %266 = vmatprep.subr.bf16.mxu0 %v301_v7  ;;  %285 = vmatprep.subr.bf16.mxu1 %v301_v7 }
  0x17   :  { %267 = vmatpush3.bf16.msra.mxu0 %v301_v7  ;;  %293 = vmatpush3.bf16.msra.mxu1 %v301_v7 }
  0x18   :  { %268 = vmatprep.subr.bf16.mxu0 %v302_v8  ;;  %286 = vmatprep.subr.bf16.mxu1 %v302_v8 }
  0x1b   :  { %269 = vmatpush3.bf16.msra.mxu0 %v302_v8  ;;  %294 = vmatpush3.bf16.msra.mxu1 %v302_v8 }
  0x1c   :  { %270 = vmatprep.subr.bf16.mxu0 %v303_v9  ;;  %287 = vmatprep.subr.bf16.mxu1 %v303_v9 }
  0x1f   :  { %271 = vmatpush3.bf16.msra.mxu0 %v303_v9  ;;  %295 = vmatpush3.bf16.msra.mxu1 %v303_v9 }
  0x22   :  { %273 = vmatmul.mubr.bf16.vlgmr.msra.gmra.mrb[0].mxu0 %v306_v10  ;;  %277 = vmatmul.mubr.bf16.vlgmr.msra.gmra.mrb[0].mxu1 %v307_v11 }
  0xf5   :  { %v274_v12 = vpop.f32.mrb[0].mxu0  ;;  %v278_v13 = vpop.f32.mrb[0].mxu1 }
  0xf6   :  { %222 = vst [vmem:[%s385_s2 + $0x10] sm:$0xff] %v274_v12  ;;  %226 = vst [vmem:[%s385_s2 + $0x30] sm:$0xff] %v278_v13  ;;  %v162_v14 = vpop.f32.mrb[1].mxu0  ;;  %v178_v15 = vpop.f32.mrb[1].mxu1 }
  0xf7   :  { %220 = vst [vmem:[%s385_s2] sm:$0xff] %v162_v14  ;;  %224 = vst [vmem:[%s385_s2 + $0x20] sm:$0xff] %v178_v15  ;;  %v275_v16 = vpop.f32.mrb[2].mxu0  ;;  %v279_v17 = vpop.f32.mrb[2].mxu1 }
  0xf8   :  { %223 = vst [vmem:[%s385_s2 + $0x18] sm:$0xff] %v275_v16  ;;  %227 = vst [vmem:[%s385_s2 + $0x38] sm:$0xff] %v279_v17  ;;  %v165_v18 = vpop.f32.mrb[3].mxu0  ;;  %v181_v19 = vpop.f32.mrb[3].mxu1 }
  0xf9   :  { %221 = vst [vmem:[%s385_s2 + $0x8] sm:$0xff] %v165_v18  ;;  %225 = vst [vmem:[%s385_s2 + $0x28] sm:$0xff] %v181_v19 }

// kernel: generator_forward.43
= control target key start
LH: loop header
LB: loop body
LE: loop exit
PB: predicated region body
PF: predicated region fallthrough
CT: control target
= control target key end

     0   :  { %vm70_vm0 = vcmask 523264   ;;  %s226_s1 = inlined_call_operand.vmem [shape: bf16[64,128], index: 1, kind: input, shape index: {}]   ;;  %s227_s0 = inlined_call_operand.vmem [shape: bf16[32,64], index: 0, kind: input, shape index: {}]   ;;  %s228_s2 = inlined_call_operand.vmem [shape: f32[32,128], index: 2, kind: output, shape index: {}]  }
   0x1   :  { %v175_v0 = vld [vmem:[%s226_s1] sm:$0xff]   ;;  %v176_v1 = vld [vmem:[%s226_s1 + $0x8] sm:$0xff]   ;;  %v177_v2 = vld [vmem:[%s226_s1 + $0x10] sm:$0xff]  }
   0x2   :  { %163 = vmatprep.subr.bf16.mxu0 %v175_v0  ;;  %v179_v3 = vld [vmem:[%s227_s0] sm:$0xff]   ;;  %v178_v4 = vld [vmem:[%s226_s1 + $0x18] sm:$0xff]   ;;  %v180_v5 = vld [vmem:[%s227_s0 + $0x8] sm:$0xff]  }
   0x3   :  { %164 = vmatpush3.bf16.msra.mxu0 %v175_v0  ;;  %171 = vmatprep.mubr.msk.bf16.mxu0 %vm70_vm0, %v179_v3 }
   0x4   :  { %165 = vmatprep.subr.bf16.mxu0 %v176_v1 }
   0x7   :  { %166 = vmatpush3.bf16.msra.mxu0 %v176_v1 }
   0x8   :  { %167 = vmatprep.subr.bf16.mxu0 %v177_v2 }
   0xb   :  { %168 = vmatpush3.bf16.msra.mxu0 %v177_v2 }
   0xc   :  { %169 = vmatprep.subr.bf16.mxu0 %v178_v4 }
   0xf   :  { %170 = vmatpush3.bf16.msra.mxu0 %v178_v4 }
  0x12   :  { %172 = vmatmul.mubr.msk.bf16.vlgmr.msra.gmra.mrb[0].mxu0 %vm70_vm0, %v180_v5 }
  0xe5   :  { %v173_v6 = vpop.f32.mrb[0].mxu0 }
  0xe6   :  { %143 = vst [vmem:[%s228_s2 + $0x10] sm:$0xff] %v173_v6  ;;  %v111_v7 = vpop.f32.mrb[1].mxu0 }
  0xe7   :  { %141 = vst [vmem:[%s228_s2] sm:$0xff] %v111_v7  ;;  %v174_v8 = vpop.f32.mrb[2].mxu0 }
  0xe8   :  { %144 = vst [vmem:[%s228_s2 + $0x18] sm:$0xff] %v174_v8  ;;  %v114_v9 = vpop.f32.mrb[3].mxu0 }
  0xe9   :  { %142 = vst [vmem:[%s228_s2 + $0x8] sm:$0xff] %v114_v9 }

// kernel: generator_forward.45
= control target key start
LH: loop header
LB: loop body
LE: loop exit
PB: predicated region body
PF: predicated region fallthrough
CT: control target
= control target key end

     0   :  { %v1118_v1 = vmov 0   ;;  %vm630_vm0 = vcmask 64512   ;;  %vm634_vm1 = vcmask 1043456   ;;  %s1472_s1 = inlined_call_operand.vmem [shape: bf16[392,512], index: 1, kind: input, shape index: {}]   ;;  %s1473_s0 = inlined_call_operand.vmem [shape: bf16[8,392], index: 0, kind: input, shape index: {}]   ;;  %s1474_s2 = inlined_call_operand.vmem [shape: f32[8,1], index: 2, kind: input, shape index: {}]   ;;  %s1475_s3 = inlined_call_operand.vmem [shape: f32[8,512], index: 3, kind: output, shape index: {}]  }
   0x1   :  { %v958_v0 = vld [vmem:[%s1472_s1 + $0x4] ss:$16 sps:$4 sm:$0xff]   ;;  %957 = vset.pattern.permute.xlu0 %v1118_v1  ;;  %v962_v3 = vld [vmem:[%s1472_s1] ss:$16 sps:$4 sm:$0xff]   ;;  %v28_v28 = vld [vmem:[%s1473_s0 + $0x8] sm:$0xff] }
   0x2   :  { %v960_v2 = vld [vmem:[%s1472_s1 + $0x204] ss:$16 sps:$4 sm:$0xff]   ;;  %647 = vmatprep.subr.bf16.mxu0 %v958_v0  ;;  %v963_v4 = vld [vmem:[%s1472_s1 + $0x200] ss:$16 sps:$4 sm:$0xff]   ;;  %v1226_v30 = vcombine.high %v28_v28, %v28_v28  ;;  %v1017_v42 = vld [vmem:[%s1472_s1 + $0xc] ss:$16 sps:$4 sm:$0xff]   ;;  %v1259_v43 = vcombine.low %v28_v28, %v28_v28 }
   0x3   :  { %688 = vmatprep.subr.bf16.mxu1 %v960_v2  ;;  %v964_v5 = vld [vmem:[%s1472_s1 + $0x24] ss:$16 sps:$4 sm:$0xff]   ;;  %648 = vmatpush1.bf16.msra.mxu0 %v962_v3  ;;  %v968_v7 = vld [vmem:[%s1472_s1 + $0x20] ss:$16 sps:$4 sm:$0xff]   ;;  %v1015_v44 = vld [vmem:[%s1472_s1 + $0x8] ss:$16 sps:$4 sm:$0xff]  }
   0x4   :  { %689 = vmatpush1.bf16.msra.mxu1 %v963_v4  ;;  %v966_v6 = vld [vmem:[%s1472_s1 + $0x224] ss:$16 sps:$4 sm:$0xff]   ;;  %649 = vmatprep.subr.bf16.mxu0 %v964_v5  ;;  %v969_v8 = vld [vmem:[%s1472_s1 + $0x220] ss:$16 sps:$4 sm:$0xff]   ;;  %v1023_v47 = vld [vmem:[%s1472_s1 + $0x2c] ss:$16 sps:$4 sm:$0xff]  }
   0x5   :  { %690 = vmatprep.subr.bf16.mxu1 %v966_v6  ;;  %v970_v9 = vld [vmem:[%s1472_s1 + $0x44] ss:$16 sps:$4 sm:$0xff]   ;;  %v974_v11 = vld [vmem:[%s1472_s1 + $0x40] ss:$16 sps:$4 sm:$0xff]   ;;  %953 = vmatprep.mubr.msk.bf16.mxu1 %vm630_vm0, %v1226_v30  ;;  %v1021_v48 = vld [vmem:[%s1472_s1 + $0x28] ss:$16 sps:$4 sm:$0xff]  }
   0x6   :  { %v972_v10 = vld [vmem:[%s1472_s1 + $0x244] ss:$16 sps:$4 sm:$0xff]   ;;  %v975_v12 = vld [vmem:[%s1472_s1 + $0x240] ss:$16 sps:$4 sm:$0xff]   ;;  %v1029_v51 = vld [vmem:[%s1472_s1 + $0x4c] ss:$16 sps:$4 sm:$0xff]  }
   0x7   :  { %650 = vmatpush1.bf16.msra.mxu0 %v968_v7  ;;  %v976_v13 = vld [vmem:[%s1472_s1 + $0x64] ss:$16 sps:$4 sm:$0xff]   ;;  %v980_v15 = vld [vmem:[%s1472_s1 + $0x60] ss:$16 sps:$4 sm:$0xff]   ;;  %v1027_v53 = vld [vmem:[%s1472_s1 + $0x48] ss:$16 sps:$4 sm:$0xff]  }
   0x8   :  { %691 = vmatpush1.bf16.msra.mxu1 %v969_v8  ;;  %651 = vmatprep.subr.bf16.mxu0 %v970_v9  ;;  %v978_v14 = vld [vmem:[%s1472_s1 + $0x264] ss:$16 sps:$4 sm:$0xff]   ;;  %v981_v16 = vld [vmem:[%s1472_s1 + $0x260] ss:$16 sps:$4 sm:$0xff]   ;;  %v1035_v57 = vld [vmem:[%s1472_s1 + $0x6c] ss:$16 sps:$4 sm:$0xff]  }
   0x9   :  { %692 = vmatprep.subr.bf16.mxu1 %v972_v10  ;;  %v982_v17 = vld [vmem:[%s1472_s1 + $0x84] ss:$16 sps:$4 sm:$0xff]   ;;  %v986_v19 = vld [vmem:[%s1472_s1 + $0x80] ss:$16 sps:$4 sm:$0xff]   ;;  %v1033_v58 = vld [vmem:[%s1472_s1 + $0x68] ss:$16 sps:$4 sm:$0xff]  }
   0xa   :  { %v984_v18 = vld [vmem:[%s1472_s1 + $0x284] ss:$16 sps:$4 sm:$0xff]   ;;  %v987_v20 = vld [vmem:[%s1472_s1 + $0x280] ss:$16 sps:$4 sm:$0xff]   ;;  %v1041_v61 = vld [vmem:[%s1472_s1 + $0x8c] ss:$16 sps:$4 sm:$0xff]  }
   0xb   :  { %652 = vmatpush1.bf16.msra.mxu0 %v974_v11  ;;  %v988_v21 = vld [vmem:[%s1472_s1 + $0xa4] ss:$16 sps:$4 sm:$0xff]   ;;  %v992_v23 = vld [vmem:[%s1472_s1 + $0xa0] ss:$16 sps:$4 sm:$0xff]   ;;  %v1039_v62 = vld [vmem:[%s1472_s1 + $0x88] ss:$16 sps:$4 sm:$0xff]  }
   0xc   :  { %693 = vmatpush1.bf16.msra.mxu1 %v975_v12  ;;  %653 = vmatprep.subr.bf16.mxu0 %v976_v13  ;;  %v990_v22 = vld [vmem:[%s1472_s1 + $0x2a4] ss:$16 sps:$4 sm:$0xff]   ;;  %v993_v24 = vld [vmem:[%s1472_s1 + $0x2a0] ss:$16 sps:$4 sm:$0xff]   ;;  %v1047_v1 = vld [vmem:[%s1472_s1 + $0xac] ss:$16 sps:$4 sm:$0xff]  }
   0xd   :  { %694 = vmatprep.subr.bf16.mxu1 %v978_v14  ;;  %v994_v25 = vld [vmem:[%s1472_s1 + $0xc4] ss:$16 sps:$4 sm:$0xff]   ;;  %v998_v27 = vld [vmem:[%s1472_s1 + $0xc0] ss:$16 sps:$4 sm:$0xff]   ;;  %v1045_v2 = vld [vmem:[%s1472_s1 + $0xa8] ss:$16 sps:$4 sm:$0xff]  }
   0xe   :  { %v996_v26 = vld [vmem:[%s1472_s1 + $0x2c4] ss:$16 sps:$4 sm:$0xff]   ;;  %v999_v29 = vld [vmem:[%s1472_s1 + $0x2c0] ss:$16 sps:$4 sm:$0xff]   ;;  %v1053_v5 = vld [vmem:[%s1472_s1 + $0xcc] ss:$16 sps:$4 sm:$0xff]  }
   0xf   :  { %654 = vmatpush1.bf16.msra.mxu0 %v980_v15  ;;  %v1000_v31 = vld [vmem:[%s1472_s1 + $0xe4] ss:$16 sps:$4 sm:$0xff]   ;;  %v1004_v34 = vld [vmem:[%s1472_s1 + $0xe0] ss:$16 sps:$4 sm:$0xff]   ;;  %v1051_v6 = vld [vmem:[%s1472_s1 + $0xc8] ss:$16 sps:$4 sm:$0xff]  }
  0x10   :  { %695 = vmatpush1.bf16.msra.mxu1 %v981_v16  ;;  %655 = vmatprep.subr.bf16.mxu0 %v982_v17  ;;  %v1002_v32 = vld [vmem:[%s1472_s1 + $0x2e4] ss:$16 sps:$4 sm:$0xff]   ;;  %v1005_v35 = vld [vmem:[%s1472_s1 + $0x2e0] ss:$16 sps:$4 sm:$0xff]   ;;  %v1059_v8 = vld [vmem:[%s1472_s1 + $0xec] ss:$16 sps:$4 sm:$0xff]  }
  0x11   :  { %696 = vmatprep.subr.bf16.mxu1 %v984_v18  ;;  %v125_v33 = vld [vmem:[%s1472_s1 + $0x300] sm:$0xff]  ;;  %v1062_v9 = vld [vmem:[%s1472_s1 + $0x20c] ss:$16 sps:$4 sm:$0xff]   ;;  %v1057_v11 = vld [vmem:[%s1472_s1 + $0xe8] ss:$16 sps:$4 sm:$0xff]  }
  0x12   :  { %v1006_v36 = vld [vmem:[%s1472_s1 + $0x104] ss:$16 sps:$4 sm:$0xff]   ;;  %v949_v37 = vcombine.high %v125_v33, %v125_v33  ;;  %v948_v38 = vcombine.low %v125_v33, %v125_v33  ;;  %v1009_v39 = vld [vmem:[%s1472_s1 + $0x100] ss:$16 sps:$4 sm:$0xff]   ;;  %v1060_v12 = vld [vmem:[%s1472_s1 + $0x208] ss:$16 sps:$4 sm:$0xff]  }
  0x13   :  { %656 = vmatpush1.bf16.msra.mxu0 %v986_v19  ;;  %v1013_v41 = vld [vmem:[%s1472_s1 + $0x124] ss:$16 sps:$4 sm:$0xff]   ;;  %v1018_v45 = vld [vmem:[%s1472_s1 + $0x120] ss:$16 sps:$4 sm:$0xff]   ;;  %v1065_v13 = vld [vmem:[%s1472_s1 + $0x10c] ss:$16 sps:$4 sm:$0xff]  }
  0x14   :  { %697 = vmatpush1.bf16.msra.mxu1 %v987_v20  ;;  %657 = vmatprep.subr.bf16.mxu0 %v988_v21  ;;  %v636_v40 = vsel %vm634_vm1, %v948_v38, 0  ;;  %v1019_v46 = vld [vmem:[%s1472_s1 + $0x144] ss:$16 sps:$4 sm:$0xff]   ;;  %v1024_v49 = vld [vmem:[%s1472_s1 + $0x140] ss:$16 sps:$4 sm:$0xff]  }
  0x15   :  { %698 = vmatprep.subr.bf16.mxu1 %v990_v22  ;;  %v1025_v50 = vld [vmem:[%s1472_s1 + $0x164] ss:$16 sps:$4 sm:$0xff]   ;;  %v1030_v55 = vld [vmem:[%s1472_s1 + $0x160] ss:$16 sps:$4 sm:$0xff]   ;;  %v1068_v14 = vld [vmem:[%s1472_s1 + $0x22c] ss:$16 sps:$4 sm:$0xff]  }
  0x16   :  { %v27_v52 = vld [vmem:[%s1473_s0] sm:$0xff]  ;;  %v1063_v16 = vld [vmem:[%s1472_s1 + $0x108] ss:$16 sps:$4 sm:$0xff]   ;;  %v1071_v18 = vld [vmem:[%s1472_s1 + $0x12c] ss:$16 sps:$4 sm:$0xff]  }
  0x17   :  { %658 = vmatpush1.bf16.msra.mxu0 %v992_v23  ;;  %v849_v54 = vcombine.high %v27_v52, %v27_v52  ;;  %v1031_v56 = vld [vmem:[%s1472_s1 + $0x184] ss:$16 sps:$4 sm:$0xff]   ;;  %v1036_v59 = vld [vmem:[%s1472_s1 + $0x180] ss:$16 sps:$4 sm:$0xff]   ;;  %v1349_v10 = vcombine.low %v27_v52, %v27_v52  ;;  %v1066_v17 = vld [vmem:[%s1472_s1 + $0x228] ss:$16 sps:$4 sm:$0xff]  }
  0x18   :  { %699 = vmatpush1.bf16.msra.mxu1 %v993_v24  ;;  %659 = vmatprep.subr.bf16.mxu0 %v994_v25  ;;  %v1037_v60 = vld [vmem:[%s1472_s1 + $0x1a4] ss:$16 sps:$4 sm:$0xff]   ;;  %v1042_v63 = vld [vmem:[%s1472_s1 + $0x1a0] ss:$16 sps:$4 sm:$0xff]   ;;  %v1074_v19 = vld [vmem:[%s1472_s1 + $0x24c] ss:$16 sps:$4 sm:$0xff]  }
  0x19   :  { %700 = vmatprep.subr.bf16.mxu1 %v996_v26  ;;  %679 = vmatprep.mubr.bf16.mxu0 %v849_v54  ;;  %v1043_v0 = vld [vmem:[%s1472_s1 + $0x1c4] ss:$16 sps:$4 sm:$0xff]   ;;  %v1048_v3 = vld [vmem:[%s1472_s1 + $0x1c0] ss:$16 sps:$4 sm:$0xff]   ;;  %v1069_v20 = vld [vmem:[%s1472_s1 + $0x128] ss:$16 sps:$4 sm:$0xff]  }
  0x1a   :  { %v1049_v4 = vld [vmem:[%s1472_s1 + $0x1e4] ss:$16 sps:$4 sm:$0xff]   ;;  %v1054_v7 = vld [vmem:[%s1472_s1 + $0x1e0] ss:$16 sps:$4 sm:$0xff]   ;;  %v1072_v21 = vld [vmem:[%s1472_s1 + $0x248] ss:$16 sps:$4 sm:$0xff]  }
  0x1b   :  { %660 = vmatpush1.bf16.msra.mxu0 %v998_v27  ;;  %v826_v15 = vld [vmem:[%s1474_s2] sm:$0xff]  ;;  %v1077_v22 = vld [vmem:[%s1472_s1 + $0x14c] ss:$16 sps:$4 sm:$0xff]   ;;  %v1075_v24 = vld [vmem:[%s1472_s1 + $0x148] ss:$16 sps:$4 sm:$0xff]  }
  0x1c   :  { %701 = vmatpush1.bf16.msra.mxu1 %v999_v29  ;;  %661 = vmatprep.subr.bf16.mxu0 %v1000_v31  ;;  %v1080_v23 = vld [vmem:[%s1472_s1 + $0x26c] ss:$16 sps:$4 sm:$0xff]   ;;  %v1078_v25 = vld [vmem:[%s1472_s1 + $0x268] ss:$16 sps:$4 sm:$0xff]  }
  0x1d   :  { %702 = vmatprep.subr.bf16.mxu1 %v1002_v32  ;;  %829 = vperm.xlu0 %957, %v826_v15   ;;  %v1083_v26 = vld [vmem:[%s1472_s1 + $0x16c] ss:$16 sps:$4 sm:$0xff]   ;;  %v1081_v28 = vld [vmem:[%s1472_s1 + $0x168] ss:$16 sps:$4 sm:$0xff]  }
  0x1e   :  { %v1086_v27 = vld [vmem:[%s1472_s1 + $0x28c] ss:$16 sps:$4 sm:$0xff]   ;;  %v1084_v29 = vld [vmem:[%s1472_s1 + $0x288] ss:$16 sps:$4 sm:$0xff]  }
  0x1f   :  { %662 = vmatpush1.bf16.msra.mxu0 %v1004_v34  ;;  %v1092_v31 = vld [vmem:[%s1472_s1 + $0x2ac] ss:$16 sps:$4 sm:$0xff]   ;;  %v1087_v32 = vld [vmem:[%s1472_s1 + $0x188] ss:$16 sps:$4 sm:$0xff]  }
  0x20   :  { %703 = vmatpush1.bf16.msra.mxu1 %v1005_v35  ;;  %663 = vmatprep.subr.bf16.mxu0 %v1006_v36  ;;  %v1090_v33 = vld [vmem:[%s1472_s1 + $0x2a8] ss:$16 sps:$4 sm:$0xff]   ;;  %v1095_v34 = vld [vmem:[%s1472_s1 + $0x1ac] ss:$16 sps:$4 sm:$0xff]  }
  0x21   :  { %952 = vmatprep.subr.msk.bf16.mxu1 %vm634_vm1, %v949_v37  ;;  %v1098_v35 = vld [vmem:[%s1472_s1 + $0x2cc] ss:$16 sps:$4 sm:$0xff]   ;;  %v1093_v36 = vld [vmem:[%s1472_s1 + $0x1a8] ss:$16 sps:$4 sm:$0xff]  }
  0x22   :  { %v1096_v37 = vld [vmem:[%s1472_s1 + $0x2c8] ss:$16 sps:$4 sm:$0xff]   ;;  %v1101_v38 = vld [vmem:[%s1472_s1 + $0x1cc] ss:$16 sps:$4 sm:$0xff]  }
  0x23   :  { %664 = vmatpush1.bf16.msra.mxu0 %v1009_v39  ;;  %v1104_v39 = vld [vmem:[%s1472_s1 + $0x2ec] ss:$16 sps:$4 sm:$0xff]  }
  0x24   :  { %705 = vmatpush1.bf16.msra.mxu1 %v636_v40  ;;  %665 = vmatprep.subr.bf16.mxu0 %v1013_v41  ;;  %v126_v40 = vld [vmem:[%s1472_s1 + $0x308] sm:$0xff] }
  0x25   :  { %729 = vmatprep.subr.bf16.mxu1 %v1017_v42  ;;  %v1099_v41 = vld [vmem:[%s1472_s1 + $0x1c8] ss:$16 sps:$4 sm:$0xff]  }
  0x26   :  { %v1102_v42 = vld [vmem:[%s1472_s1 + $0x2e8] ss:$16 sps:$4 sm:$0xff]  }
  0x27   :  { %721 = vmatmul.mubr.bf16.vlgmr.msra.gmra.mrb[0].mxu1 %v1259_v43  ;;  %666 = vmatpush1.bf16.msra.mxu0 %v1018_v45  ;;  %v951_v45 = vcombine.high %v126_v40, %v126_v40 }
  0x28   :  { %730 = vmatpush1.bf16.msra.mxu1 %v1015_v44  ;;  %667 = vmatprep.subr.bf16.mxu0 %v1019_v46  ;;  %v1107_v44 = vld [vmem:[%s1472_s1 + $0x1ec] ss:$16 sps:$4 sm:$0xff]   ;;  %v950_v46 = vcombine.low %v126_v40, %v126_v40 }
  0x29   :  { %731 = vmatprep.subr.bf16.mxu1 %v1023_v47  ;;  %761 = vmatprep.mubr.bf16.mxu1 %v849_v54  ;;  %v1105_v47 = vld [vmem:[%s1472_s1 + $0x1e8] ss:$16 sps:$4 sm:$0xff]  }
  0x2b   :  { %668 = vmatpush1.bf16.msra.mxu0 %v1024_v49 }
  0x2c   :  { %732 = vmatpush1.bf16.msra.mxu1 %v1021_v48  ;;  %669 = vmatprep.subr.bf16.mxu0 %v1025_v50  ;;  %v642_v48 = vsel %vm634_vm1, %v950_v46, 0 }
  0x2d   :  { %733 = vmatprep.subr.bf16.mxu1 %v1029_v51 }
  0x2f   :  { %670 = vmatpush1.bf16.msra.mxu0 %v1030_v55 }
  0x30   :  { %734 = vmatpush1.bf16.msra.mxu1 %v1027_v53  ;;  %671 = vmatprep.subr.bf16.mxu0 %v1031_v56 }
  0x31   :  { %735 = vmatprep.subr.bf16.mxu1 %v1035_v57 }
  0x33   :  { %672 = vmatpush1.bf16.msra.mxu0 %v1036_v59 }
  0x34   :  { %736 = vmatpush1.bf16.msra.mxu1 %v1033_v58  ;;  %673 = vmatprep.subr.bf16.mxu0 %v1037_v60 }
  0x35   :  { %737 = vmatprep.subr.bf16.mxu1 %v1041_v61 }
  0x37   :  { %674 = vmatpush1.bf16.msra.mxu0 %v1042_v63 }
  0x38   :  { %738 = vmatpush1.bf16.msra.mxu1 %v1039_v62  ;;  %675 = vmatprep.subr.bf16.mxu0 %v1043_v0 }
  0x39   :  { %739 = vmatprep.subr.bf16.mxu1 %v1047_v1 }
  0x3b   :  { %676 = vmatpush1.bf16.msra.mxu0 %v1048_v3 }
  0x3c   :  { %740 = vmatpush1.bf16.msra.mxu1 %v1045_v2  ;;  %677 = vmatprep.subr.bf16.mxu0 %v1049_v4 }
  0x3d   :  { %741 = vmatprep.subr.bf16.mxu1 %v1053_v5 }
  0x3f   :  { %678 = vmatpush1.bf16.msra.mxu0 %v1054_v7 }
  0x40   :  { %742 = vmatpush1.bf16.msra.mxu1 %v1051_v6  ;;  %770 = vmatprep.subr.bf16.mxu0 %v1062_v9 }
  0x41   :  { %743 = vmatprep.subr.bf16.mxu1 %v1059_v8 }
  0x42   :  { %680 = vmatmul.mubr.bf16.vlgmr.msra.gmra.mrb[0].mxu0 %v1349_v10 }
  0x43   :  { %771 = vmatpush1.bf16.msra.mxu0 %v1060_v12  ;;  %955 = vmatprep.mubr.msk.bf16.mxu0 %vm630_vm0, %v1226_v30  ;;  %v1089_v30 = vld [vmem:[%s1472_s1 + $0x18c] ss:$16 sps:$4 sm:$0xff]  }
  0x44   :  { %744 = vmatpush1.bf16.msra.mxu1 %v1057_v11  ;;  %772 = vmatprep.subr.bf16.mxu0 %v1068_v14 }
  0x45   :  { %745 = vmatprep.subr.bf16.mxu1 %v1065_v13 }
  0x47   :  { %773 = vmatpush1.bf16.msra.mxu0 %v1066_v17 }
  0x48   :  { %746 = vmatpush1.bf16.msra.mxu1 %v1063_v16  ;;  %774 = vmatprep.subr.bf16.mxu0 %v1074_v19 }
  0x49   :  { %747 = vmatprep.subr.bf16.mxu1 %v1071_v18 }
  0x4b   :  { %775 = vmatpush1.bf16.msra.mxu0 %v1072_v21 }
  0x4c   :  { %748 = vmatpush1.bf16.msra.mxu1 %v1069_v20  ;;  %776 = vmatprep.subr.bf16.mxu0 %v1080_v23 }
  0x4d   :  { %749 = vmatprep.subr.bf16.mxu1 %v1077_v22 }
  0x4f   :  { %777 = vmatpush1.bf16.msra.mxu0 %v1078_v25 }
  0x50   :  { %750 = vmatpush1.bf16.msra.mxu1 %v1075_v24  ;;  %778 = vmatprep.subr.bf16.mxu0 %v1086_v27 }
  0x51   :  { %751 = vmatprep.subr.bf16.mxu1 %v1083_v26 }
  0x53   :  { %779 = vmatpush1.bf16.msra.mxu0 %v1084_v29 }
  0x54   :  { %752 = vmatpush1.bf16.msra.mxu1 %v1081_v28  ;;  %780 = vmatprep.subr.bf16.mxu0 %v1092_v31 }
  0x55   :  { %753 = vmatprep.subr.bf16.mxu1 %v1089_v30 }
  0x57   :  { %781 = vmatpush1.bf16.msra.mxu0 %v1090_v33 }
  0x58   :  { %754 = vmatpush1.bf16.msra.mxu1 %v1087_v32  ;;  %782 = vmatprep.subr.bf16.mxu0 %v1098_v35 }
  0x59   :  { %755 = vmatprep.subr.bf16.mxu1 %v1095_v34 }
  0x5b   :  { %783 = vmatpush1.bf16.msra.mxu0 %v1096_v37 }
  0x5c   :  { %756 = vmatpush1.bf16.msra.mxu1 %v1093_v36  ;;  %784 = vmatprep.subr.bf16.mxu0 %v1104_v39 }
  0x5d   :  { %757 = vmatprep.subr.bf16.mxu1 %v1101_v38 }
  0x5f   :  { %785 = vmatpush1.bf16.msra.mxu0 %v1102_v42 }
  0x60   :  { %758 = vmatpush1.bf16.msra.mxu1 %v1099_v41  ;;  %954 = vmatprep.subr.msk.bf16.mxu0 %vm634_vm1, %v951_v45 }
  0x61   :  { %759 = vmatprep.subr.bf16.mxu1 %v1107_v44 }
  0x63   :  { %787 = vmatpush1.bf16.msra.mxu0 %v642_v48 }
  0x64   :  { %760 = vmatpush1.bf16.msra.mxu1 %v1105_v47 }
  0x66   :  { %803 = vmatmul.mubr.bf16.vlgmr.msra.gmra.mrb[4].mxu0 %v1259_v43 }
  0x67   :  { %762 = vmatmul.mubr.bf16.vlgmr.msra.gmra.mrb[4].mxu1 %v1349_v10 }
  0x9c   :  { %v830_v54 = vpop.permute.xlu0 %829 }
  0xfa   :  { %v722_v49 = vpop.f32.mrb[0].mxu1 }
  0xfb   :  { %v724_v50 = vpop.f32.mrb[1].mxu1 }
  0xfc   :  { %v726_v51 = vpop.f32.mrb[2].mxu1 }
  0xfd   :  { %v727_v52 = vpop.f32.mrb[3].mxu1 }
 0x115   :  { %v681_v53 = vpop.f32.mrb[0].mxu0 }
 0x116   :  { %v723_v55 = vadd.f32 %v722_v49, %v681_v53  ;;  %v683_v56 = vpop.f32.mrb[1].mxu0 }
 0x117   :  { %v725_v57 = vadd.f32 %v724_v50, %v683_v56  ;;  %v685_v58 = vpop.f32.mrb[2].mxu0 }
 0x118   :  { %v832_v59 = vadd.f32 %v830_v54, %v723_v55  ;;  %v686_v60 = vpop.f32.mrb[3].mxu0 }
 0x119   :  { %v833_v61 = vadd.f32 %v830_v54, %v725_v57 }
 0x11a   :  { %1110 = vtanh.f32 %v832_v59 }
 0x11b   :  { %1112 = vtanh.f32 %v833_v61 }
 0x124   :  { %v1111_v62 = vpop.eup %1110 }
 0x125   :  { %v1113_v63 = vpop.eup %1112  ;;  %840 = vst [vmem:[%s1475_s3] sm:$0xff] %v1111_v62 }
 0x126   :  { %841 = vst [vmem:[%s1475_s3 + $0x8] sm:$0xff] %v1113_v63 }
 0x139   :  { %v804_v0 = vpop.f32.mrb[4].mxu0 }
 0x13a   :  { %v763_v43 = vpop.f32.mrb[4].mxu1  ;;  %v806_v3 = vpop.f32.mrb[5].mxu0 }
 0x13b   :  { %v805_v1 = vadd.f32 %v804_v0, %v763_v43  ;;  %v765_v2 = vpop.f32.mrb[5].mxu1  ;;  %v808_v6 = vpop.f32.mrb[6].mxu0 }
 0x13c   :  { %v807_v4 = vadd.f32 %v806_v3, %v765_v2  ;;  %v767_v5 = vpop.f32.mrb[6].mxu1  ;;  %v809_v9 = vpop.f32.mrb[7].mxu0 }
 0x13d   :  { %v834_v7 = vadd.f32 %v830_v54, %v805_v1  ;;  %v768_v8 = vpop.f32.mrb[7].mxu1 }
 0x13e   :  { %v835_v10 = vadd.f32 %v830_v54, %v807_v4 }
 0x13f   :  { %1114 = vtanh.f32 %v834_v7 }
 0x140   :  { %1116 = vtanh.f32 %v835_v10 }
 0x149   :  { %v1115_v11 = vpop.eup %1114 }
 0x14a   :  { %v1117_v12 = vpop.eup %1116  ;;  %842 = vst [vmem:[%s1475_s3 + $0x10] sm:$0xff] %v1115_v11 }
 0x14b   :  { %843 = vst [vmem:[%s1475_s3 + $0x18] sm:$0xff] %v1117_v12 }

</bundles_post_ra>
